<compile_context>
chip_gen: v7x
topology: tpu7x:2x2x1
jax: 0.10.0
libtpu: 0.0.40
codegen_flags: <defaults>
</compile_context>

<pallas_src>
import functools

import jax
import jax.numpy as jnp
from jax.experimental import pallas as pl
from jax.experimental.pallas import tpu as pltpu


def _vmem_spec():
    return pl.BlockSpec(memory_space=pltpu.MemorySpace.VMEM)


# ---------------------------- single fused Pallas kernel ----------------------------

def _fused_forward_kernel(
        pooled_ref, feature_ref,
        pooler_w_ref, pooler_b_ref,
        red_w_ref, red_b_ref,
        bn_gamma_ref, bn_beta_ref,
        rel_w_ref, rel_b_ref,
        wih_ref, whh_ref, lstm_b_ref,
        cred_w_ref, cred_b_ref,
        head_w_ref, head_b_ref,
        out_ref,
        *, n_valid, n_steps, bp, hp, eps):
    bf16 = jnp.bfloat16
    f32 = jnp.float32

    # ---- batched BERT-pooler (tanh 768->768) + reduction (768->128) for ALL paths ----
    pooled = pooled_ref[...]                                           # bf16 [(3+C)*BP, 768]
    t = jnp.tanh(jnp.dot(pooled, pooler_w_ref[...],
                         preferred_element_type=f32) + pooler_b_ref[...])
    enc = (jnp.dot(t.astype(bf16), red_w_ref[...],
                   preferred_element_type=f32) + red_b_ref[...])        # f32 [(3+C)*BP, HP]

    left = enc[0 * bp:1 * bp]
    rel_left = enc[1 * bp:2 * bp]
    right = enc[2 * bp:3 * bp]

    # ---- BatchNorm1d(44): per-batch stats, divisor = true batch size ----
    f = feature_ref[...]                                               # f32 [BP, HP]
    inv_n = 1.0 / jnp.float32(n_valid)
    mean = jnp.sum(f, axis=0, keepdims=True) * inv_n
    var = jnp.maximum(jnp.sum(f * f, axis=0, keepdims=True) * inv_n - mean * mean, 0.0)
    f_slab = (f - mean) * jax.lax.rsqrt(var + eps) * bn_gamma_ref[...] + bn_beta_ref[...]

    # ---- relevancy: Linear(216 -> 20) as ONE K=256 matmul, output in lanes [0,20) ----
    lr = jnp.concatenate([left, right], axis=-1).astype(bf16)          # [BP, 2*HP]
    rel_slab = jnp.dot(lr, rel_w_ref[...], preferred_element_type=f32) + rel_b_ref[...]

    # ---- SQACILSTM stub: stacked gates, input projection + bias hoisted, unrolled ----
    x_all = enc[3 * bp:(3 + n_steps) * bp].astype(bf16)                # [C*BP, HP] time-major
    whh = whh_ref[...]                                                 # bf16
    x_proj = (jnp.dot(x_all, wih_ref[...], preferred_element_type=f32)
              + lstm_b_ref[...])                                       # bias folded once

    h = rel_left                                                       # h0 = question emb
    c = right                                                          # c0 = answer emb
    for step in range(n_steps):                                        # C is small & static
        gates = (x_proj[step * bp:(step + 1) * bp]
                 + jnp.dot(h.astype(bf16), whh, preferred_element_type=f32))
        i_g = jax.nn.sigmoid(gates[:, 0 * hp:1 * hp])
        f_g = jax.nn.sigmoid(gates[:, 1 * hp:2 * hp])
        g_g = jnp.tanh(gates[:, 2 * hp:3 * hp])
        o_g = jax.nn.sigmoid(gates[:, 3 * hp:4 * hp])
        c = f_g * c + i_g * g_g
        h = o_g * jnp.tanh(c)

    # ---- credibility: (lstm output projection) ∘ Linear(108 -> 64), pre-composed ----
    cred_slab = (jnp.dot(h.astype(bf16), cred_w_ref[...],
                         preferred_element_type=f32) + cred_b_ref[...])  # lanes [64,128)

    # usefulness input slab = [relevancy | feature_bn | credibility]  (lane-dense 128)
    uq = rel_slab + f_slab + cred_slab

    # ---- heads: usefulness Linear(128->2) at lanes [0,2), community Linear(64->1) at lane 2 ----
    out = (jnp.dot(uq.astype(bf16), head_w_ref[...],
                   preferred_element_type=f32) + head_b_ref[...])
    out_ref[...] = out.astype(out_ref.dtype)


# ---------------------------- jitted wrapper (glue + kernel) ----------------------------

def _forward_impl(params, text_left, rel_text_left, text_right, comment, feature,
                  *, bp, hp, bh, rel_off, feat_dim, num_labels):
    B, C, _ = comment.shape

    def embed_mean(tok):
        # Stub of the BERT encoder body: embed tokens and mean-pool.
        return jnp.mean(jnp.take(params["embedding"], tok, axis=0), axis=-2)

    pooled_left = embed_mean(text_left)                                # [B, 768]
    pooled_rel = embed_mean(rel_text_left)                             # [B, 768]
    pooled_right = embed_mean(text_right)                              # [B, 768]
    pooled_com = embed_mean(jnp.transpose(comment, (1, 0, 2)))         # [C, B, 768] time-major

    pooled_all = jnp.concatenate(
        [jnp.stack([pooled_left, pooled_rel, pooled_right], axis=0), pooled_com], axis=0)
    pooled = (jnp.zeros((3 + C, bp, bh), jnp.float32)
              .at[:, :B].set(pooled_all.astype(jnp.float32))
              .reshape(((3 + C) * bp, bh))
              .astype(jnp.bfloat16))                                   # [(3+C)*BP, 768] bf16

    feature_slab = jnp.zeros((bp, hp), jnp.float32).at[
        :B, rel_off:rel_off + feat_dim].set(feature.astype(jnp.float32))

    out = pl.pallas_call(
        functools.partial(_fused_forward_kernel,
                          n_valid=B, n_steps=C, bp=bp, hp=hp, eps=1e-5),
        out_shape=jax.ShapeDtypeStruct((bp, hp), jnp.float32),
        in_specs=[_vmem_spec()] * 17,
        out_specs=_vmem_spec(),
        compiler_params=pltpu.CompilerParams(vmem_limit_bytes=32 * 1024 * 1024),
    )(pooled, feature_slab,
      params["pooler_w"], params["pooler_b"],
      params["red_w"], params["red_b"],
      params["bn_gamma"], params["bn_beta"],
      params["rel_w"], params["rel_b"],
      params["lstm_wih"], params["lstm_whh"], params["lstm_b"],
      params["cred_w"], params["cred_b"],
      params["head_w"], params["head_b"])

    outputs = out[:B, 1:2]                                             # [:, 1].unsqueeze(1)
    community = out[:B, num_labels:num_labels + 1]
    return outputs, community


# ---------------------------- Model ----------------------------

class OurModelPallas:
    def __init__(self, key, hidden_size=108, bert_hidden_size=768,
                 num_labels=2, feature_dim=44, vocab_size=1000,
                 padded_hidden=128, padded_batch=8):
        H, HP = hidden_size, padded_hidden
        BH = bert_hidden_size
        REL, CRED = 20, 64
        assert REL + feature_dim + CRED == HP, "usefulness slab must be 128 lanes"
        self.H, self.HP, self.BH = H, HP, BH
        self.REL, self.CRED, self.FEAT = REL, CRED, feature_dim
        self.BP = padded_batch
        self.num_labels = num_labels

        ks = iter(jax.random.split(key, 32))
        bf16 = jnp.bfloat16

        def w(shape, scale=0.02):
            return (scale * jax.random.normal(next(ks), shape)).astype(jnp.float32)

        def pad_to(a, shape, r0=0, c0=0):
            buf = jnp.zeros(shape, jnp.float32)
            return buf.at[r0:r0 + a.shape[0], c0:c0 + a.shape[1]].set(a)

        cred_off = REL + feature_dim
        p = {}

        # stub BERT encoder + pooler                       # TODO(synk): real BertModel weights
        p["embedding"] = w((vocab_size, BH))
        p["pooler_w"] = w((BH, BH)).astype(bf16)
        p["pooler_b"] = w((1, BH))
        # reduction_layer: Linear(768 -> 108), lane-padded to 128
        p["red_w"] = pad_to(w((BH, H)), (BH, HP)).astype(bf16)
        p["red_b"] = pad_to(w((1, H)), (1, HP))
        # feature_norm: BatchNorm1d(44) params placed at lanes [REL, REL+44)
        p["bn_gamma"] = pad_to(jnp.ones((1, feature_dim), jnp.float32), (1, HP), c0=REL)
        p["bn_beta"] = jnp.zeros((1, HP), jnp.float32)
        # relevancy_layer: Linear(216 -> 20) as a single stacked [2*HP, HP] weight,
        # rows [0:H) act on `left`, rows [HP:HP+H) act on `right`; out lanes [0, 20)
        rel_w = w((2 * H, REL))
        rel_w_full = jnp.zeros((2 * HP, HP), jnp.float32)
        rel_w_full = rel_w_full.at[:H, :REL].set(rel_w[:H])
        rel_w_full = rel_w_full.at[HP:HP + H, :REL].set(rel_w[H:])
        p["rel_w"] = rel_w_full.astype(bf16)
        p["rel_b"] = pad_to(w((1, REL)), (1, HP))
        # SQACILSTM stub: single-layer LSTM, stacked (i,f,g,o) gates
        wih = jnp.zeros((HP, 4 * HP), jnp.float32)
        whh = jnp.zeros((HP, 4 * HP), jnp.float32)
        b = jnp.zeros((1, 4 * HP), jnp.float32)
        for k in range(4):
            wih = wih.at[:H, k * HP:k * HP + H].set(w((H, H)))
            whh = whh.at[:H, k * HP:k * HP + H].set(w((H, H)))
            b = b.at[:, k * HP:k * HP + H].set(w((1, H)))
        p["lstm_wih"], p["lstm_whh"], p["lstm_b"] = wih.astype(bf16), whh.astype(bf16), b
        # lstm output projection pre-composed with credibility_layer Linear(108 -> 64):
        #   cred_w' = lstm_out_w @ cred_w ; cred_b' = lstm_out_b @ cred_w + cred_b
        lstm_out_w = pad_to(w((H, H)), (HP, HP))
        lstm_out_b = pad_to(w((1, H)), (1, HP))
        cred_w_raw = pad_to(w((H, CRED)), (HP, HP), c0=cred_off)
        cred_b_raw = pad_to(w((1, CRED)), (1, HP), c0=cred_off)
        p["cred_w"] = (lstm_out_w @ cred_w_raw).astype(bf16)
        p["cred_b"] = lstm_out_b @ cred_w_raw + cred_b_raw
        # usefulness_layer Linear(128 -> num_labels) at lanes [0, num_labels),
        # community_support_layer Linear(64 -> 1) at lane num_labels
        head_w = jnp.zeros((HP, HP), jnp.float32)
        head_b = jnp.zeros((1, HP), jnp.float32)
        head_w = head_w.at[:, 0:num_labels].set(w((HP, num_labels)))
        head_w = head_w.at[cred_off:, num_labels:num_labels + 1].set(w((CRED, 1)))
        head_b = head_b.at[:, 0:num_labels].set(w((1, num_labels)))
        head_b = head_b.at[:, num_labels:num_labels + 1].set(w((1, 1)))
        p["head_w"], p["head_b"] = head_w.astype(bf16), head_b

        self.params = p
        self._forward = jax.jit(functools.partial(
            _forward_impl, bp=self.BP, hp=HP, bh=BH,
            rel_off=REL, feat_dim=feature_dim, num_labels=num_labels))

    def __call__(self, inputs):
        # TODO(synk): inputs["ping"] (and SQACILSTM attention/ci_mode) not modeled.
        return self._forward(self.params,
                             inputs["text_left"], inputs["rel_text_left"],
                             inputs["text_right"], inputs["comment"],
                             inputs["feature"])


# ---------------------------- main ----------------------------

if __name__ == "__main__":
    key = jax.random.PRNGKey(0)
    k_model, k_tl, k_rl, k_tr, k_cm, k_pg, k_ft = jax.random.split(key, 7)

    B, L, C, FEAT, VOCAB = 2, 8, 3, 44, 1000
    model = OurModelPallas(k_model, hidden_size=108, bert_hidden_size=768,
                           num_labels=2, feature_dim=FEAT, vocab_size=VOCAB)

    inputs = {
        "text_left": jax.random.randint(k_tl, (B, L), 0, VOCAB, dtype=jnp.int32),
        "rel_text_left": jax.random.randint(k_rl, (B, L), 0, VOCAB, dtype=jnp.int32),
        "text_right": jax.random.randint(k_tr, (B, L), 0, VOCAB, dtype=jnp.int32),
        "comment": jax.random.randint(k_cm, (B, C, L), 0, VOCAB, dtype=jnp.int32),
        "ping": jax.random.normal(k_pg, (B, C), dtype=jnp.float32),
        "feature": jax.random.normal(k_ft, (B, FEAT), dtype=jnp.float32),
    }

    outputs, community = model(inputs)
    outputs = jax.block_until_ready(outputs)
    community = jax.block_until_ready(community)
    assert outputs.shape == (B, 1) and community.shape == (B, 1)
    assert bool(jnp.all(jnp.isfinite(outputs))) and bool(jnp.all(jnp.isfinite(community)))
    print("KERNEL_OK")
</pallas_src>

<mosaic_0001>
module attributes {stable_mosaic.version = 11 : i64} {
  func.func @_fused_forward_kernel(%arg0: memref<48x768xbf16, #tpu.memory_space<vmem>>, %arg1: memref<8x128xf32, #tpu.memory_space<vmem>>, %arg2: memref<768x768xbf16, #tpu.memory_space<vmem>>, %arg3: memref<1x768xf32, #tpu.memory_space<vmem>>, %arg4: memref<768x128xbf16, #tpu.memory_space<vmem>>, %arg5: memref<1x128xf32, #tpu.memory_space<vmem>>, %arg6: memref<1x128xf32, #tpu.memory_space<vmem>>, %arg7: memref<1x128xf32, #tpu.memory_space<vmem>>, %arg8: memref<256x128xbf16, #tpu.memory_space<vmem>>, %arg9: memref<1x128xf32, #tpu.memory_space<vmem>>, %arg10: memref<128x512xbf16, #tpu.memory_space<vmem>>, %arg11: memref<128x512xbf16, #tpu.memory_space<vmem>>, %arg12: memref<1x512xf32, #tpu.memory_space<vmem>>, %arg13: memref<128x128xbf16, #tpu.memory_space<vmem>>, %arg14: memref<1x128xf32, #tpu.memory_space<vmem>>, %arg15: memref<128x128xbf16, #tpu.memory_space<vmem>>, %arg16: memref<1x128xf32, #tpu.memory_space<vmem>>, %arg17: memref<8x128xf32, #tpu.memory_space<vmem>>) attributes {dimension_semantics = [], scalar_prefetch = 0 : i64, scratch_operands = 0 : i64, tpu.core_type = #tpu.core_type<tc>} {
    %c0 = arith.constant 0 : index
    %c0_0 = arith.constant 0 : index
    %0 = vector.load %arg0[%c0, %c0_0] : memref<48x768xbf16, #tpu.memory_space<vmem>>, vector<48x768xbf16>
    %c0_1 = arith.constant 0 : index
    %c0_2 = arith.constant 0 : index
    %1 = vector.load %arg2[%c0_1, %c0_2] : memref<768x768xbf16, #tpu.memory_space<vmem>>, vector<768x768xbf16>
    %cst = arith.constant dense<0.000000e+00> : vector<48x768xf32>
    %2 = tpu.matmul %0, %1, %cst {dimension_numbers = #tpu.dot_dimension_numbers<[1], [0], [0], [1], [0, 0, 1, 1], [], []>} : vector<48x768xbf16>, vector<768x768xbf16>, vector<48x768xf32> -> vector<48x768xf32>
    %c0_3 = arith.constant 0 : index
    %c0_4 = arith.constant 0 : index
    %3 = vector.load %arg3[%c0_3, %c0_4] : memref<1x768xf32, #tpu.memory_space<vmem>>, vector<1x768xf32>
    %4 = vector.broadcast %3 : vector<1x768xf32> to vector<48x768xf32>
    %5 = arith.addf %2, %4 : vector<48x768xf32>
    %6 = math.tanh %5 : vector<48x768xf32>
    %7 = arith.truncf %6 : vector<48x768xf32> to vector<48x768xbf16>
    %c0_5 = arith.constant 0 : index
    %c0_6 = arith.constant 0 : index
    %8 = vector.load %arg4[%c0_5, %c0_6] : memref<768x128xbf16, #tpu.memory_space<vmem>>, vector<768x128xbf16>
    %cst_7 = arith.constant dense<0.000000e+00> : vector<48x128xf32>
    %9 = tpu.matmul %7, %8, %cst_7 {dimension_numbers = #tpu.dot_dimension_numbers<[1], [0], [0], [1], [0, 0, 1, 1], [], []>} : vector<48x768xbf16>, vector<768x128xbf16>, vector<48x128xf32> -> vector<48x128xf32>
    %c0_8 = arith.constant 0 : index
    %c0_9 = arith.constant 0 : index
    %10 = vector.load %arg5[%c0_8, %c0_9] : memref<1x128xf32, #tpu.memory_space<vmem>>, vector<1x128xf32>
    %11 = vector.broadcast %10 : vector<1x128xf32> to vector<48x128xf32>
    %12 = arith.addf %9, %11 : vector<48x128xf32>
    %13 = vector.extract_strided_slice %12 {offsets = [0, 0], sizes = [8, 128], strides = [1, 1]} : vector<48x128xf32> to vector<8x128xf32>
    %14 = vector.extract_strided_slice %12 {offsets = [8, 0], sizes = [8, 128], strides = [1, 1]} : vector<48x128xf32> to vector<8x128xf32>
    %15 = vector.extract_strided_slice %12 {offsets = [16, 0], sizes = [8, 128], strides = [1, 1]} : vector<48x128xf32> to vector<8x128xf32>
    %c0_10 = arith.constant 0 : index
    %c0_11 = arith.constant 0 : index
    %16 = vector.load %arg1[%c0_10, %c0_11] : memref<8x128xf32, #tpu.memory_space<vmem>>, vector<8x128xf32>
    %cst_12 = arith.constant 1.000000e+00 : f32
    %cst_13 = arith.constant 2.000000e+00 : f32
    %17 = arith.divf %cst_12, %cst_13 : f32
    %cst_14 = arith.constant dense<0.000000e+00> : vector<128xf32>
    %18 = vector.multi_reduction <add>, %16, %cst_14 [0] : vector<8x128xf32> to vector<128xf32>
    %19 = vector.shape_cast %18 : vector<128xf32> to vector<1x128xf32>
    %20 = vector.broadcast %17 : f32 to vector<1x128xf32>
    %21 = arith.mulf %19, %20 : vector<1x128xf32>
    %22 = arith.mulf %16, %16 : vector<8x128xf32>
    %cst_15 = arith.constant dense<0.000000e+00> : vector<128xf32>
    %23 = vector.multi_reduction <add>, %22, %cst_15 [0] : vector<8x128xf32> to vector<128xf32>
    %24 = vector.shape_cast %23 : vector<128xf32> to vector<1x128xf32>
    %25 = vector.broadcast %17 : f32 to vector<1x128xf32>
    %26 = arith.mulf %24, %25 : vector<1x128xf32>
    %27 = arith.mulf %21, %21 : vector<1x128xf32>
    %28 = arith.subf %26, %27 : vector<1x128xf32>
    %cst_16 = arith.constant 0.000000e+00 : f32
    %29 = vector.broadcast %cst_16 : f32 to vector<1x128xf32>
    %30 = arith.maximumf %28, %29 : vector<1x128xf32>
    %31 = vector.broadcast %21 : vector<1x128xf32> to vector<8x128xf32>
    %32 = arith.subf %16, %31 : vector<8x128xf32>
    %cst_17 = arith.constant 9.99999974E-6 : f32
    %33 = vector.broadcast %cst_17 : f32 to vector<1x128xf32>
    %34 = arith.addf %30, %33 : vector<1x128xf32>
    %35 = math.rsqrt %34 : vector<1x128xf32>
    %36 = vector.broadcast %35 : vector<1x128xf32> to vector<8x128xf32>
    %37 = arith.mulf %32, %36 : vector<8x128xf32>
    %c0_18 = arith.constant 0 : index
    %c0_19 = arith.constant 0 : index
    %38 = vector.load %arg6[%c0_18, %c0_19] : memref<1x128xf32, #tpu.memory_space<vmem>>, vector<1x128xf32>
    %39 = vector.broadcast %38 : vector<1x128xf32> to vector<8x128xf32>
    %40 = arith.mulf %37, %39 : vector<8x128xf32>
    %c0_20 = arith.constant 0 : index
    %c0_21 = arith.constant 0 : index
    %41 = vector.load %arg7[%c0_20, %c0_21] : memref<1x128xf32, #tpu.memory_space<vmem>>, vector<1x128xf32>
    %42 = vector.broadcast %41 : vector<1x128xf32> to vector<8x128xf32>
    %43 = arith.addf %40, %42 : vector<8x128xf32>
    %44 = tpu.concatenate %13, %15 in 1 : vector<8x128xf32>, vector<8x128xf32> -> vector<8x256xf32>
    %45 = arith.truncf %44 : vector<8x256xf32> to vector<8x256xbf16>
    %c0_22 = arith.constant 0 : index
    %c0_23 = arith.constant 0 : index
    %46 = vector.load %arg8[%c0_22, %c0_23] : memref<256x128xbf16, #tpu.memory_space<vmem>>, vector<256x128xbf16>
    %cst_24 = arith.constant dense<0.000000e+00> : vector<8x128xf32>
    %47 = tpu.matmul %45, %46, %cst_24 {dimension_numbers = #tpu.dot_dimension_numbers<[1], [0], [0], [1], [0, 0, 1, 1], [], []>} : vector<8x256xbf16>, vector<256x128xbf16>, vector<8x128xf32> -> vector<8x128xf32>
    %c0_25 = arith.constant 0 : index
    %c0_26 = arith.constant 0 : index
    %48 = vector.load %arg9[%c0_25, %c0_26] : memref<1x128xf32, #tpu.memory_space<vmem>>, vector<1x128xf32>
    %49 = vector.broadcast %48 : vector<1x128xf32> to vector<8x128xf32>
    %50 = arith.addf %47, %49 : vector<8x128xf32>
    %51 = vector.extract_strided_slice %12 {offsets = [24, 0], sizes = [24, 128], strides = [1, 1]} : vector<48x128xf32> to vector<24x128xf32>
    %52 = arith.truncf %51 : vector<24x128xf32> to vector<24x128xbf16>
    %c0_27 = arith.constant 0 : index
    %c0_28 = arith.constant 0 : index
    %53 = vector.load %arg11[%c0_27, %c0_28] : memref<128x512xbf16, #tpu.memory_space<vmem>>, vector<128x512xbf16>
    %c0_29 = arith.constant 0 : index
    %c0_30 = arith.constant 0 : index
    %54 = vector.load %arg10[%c0_29, %c0_30] : memref<128x512xbf16, #tpu.memory_space<vmem>>, vector<128x512xbf16>
    %cst_31 = arith.constant dense<0.000000e+00> : vector<24x512xf32>
    %55 = tpu.matmul %52, %54, %cst_31 {dimension_numbers = #tpu.dot_dimension_numbers<[1], [0], [0], [1], [0, 0, 1, 1], [], []>} : vector<24x128xbf16>, vector<128x512xbf16>, vector<24x512xf32> -> vector<24x512xf32>
    %c0_32 = arith.constant 0 : index
    %c0_33 = arith.constant 0 : index
    %56 = vector.load %arg12[%c0_32, %c0_33] : memref<1x512xf32, #tpu.memory_space<vmem>>, vector<1x512xf32>
    %57 = vector.broadcast %56 : vector<1x512xf32> to vector<24x512xf32>
    %58 = arith.addf %55, %57 : vector<24x512xf32>
    %59 = vector.extract_strided_slice %58 {offsets = [0, 0], sizes = [8, 512], strides = [1, 1]} : vector<24x512xf32> to vector<8x512xf32>
    %60 = arith.truncf %14 : vector<8x128xf32> to vector<8x128xbf16>
    %cst_34 = arith.constant dense<0.000000e+00> : vector<8x512xf32>
    %61 = tpu.matmul %60, %53, %cst_34 {dimension_numbers = #tpu.dot_dimension_numbers<[1], [0], [0], [1], [0, 0, 1, 1], [], []>} : vector<8x128xbf16>, vector<128x512xbf16>, vector<8x512xf32> -> vector<8x512xf32>
    %62 = arith.addf %59, %61 : vector<8x512xf32>
    %63 = vector.extract_strided_slice %62 {offsets = [0, 0], sizes = [8, 128], strides = [1, 1]} : vector<8x512xf32> to vector<8x128xf32>
    %64 = arith.negf %63 : vector<8x128xf32>
    %65 = math.exp %64 : vector<8x128xf32>
    %cst_35 = arith.constant 1.000000e+00 : f32
    %66 = vector.broadcast %cst_35 : f32 to vector<8x128xf32>
    %67 = arith.addf %66, %65 : vector<8x128xf32>
    %68 = arith.divf %66, %67 : vector<8x128xf32>
    %69 = vector.extract_strided_slice %62 {offsets = [0, 128], sizes = [8, 128], strides = [1, 1]} : vector<8x512xf32> to vector<8x128xf32>
    %70 = arith.negf %69 : vector<8x128xf32>
    %71 = math.exp %70 : vector<8x128xf32>
    %cst_36 = arith.constant 1.000000e+00 : f32
    %72 = vector.broadcast %cst_36 : f32 to vector<8x128xf32>
    %73 = arith.addf %72, %71 : vector<8x128xf32>
    %74 = arith.divf %72, %73 : vector<8x128xf32>
    %75 = vector.extract_strided_slice %62 {offsets = [0, 256], sizes = [8, 128], strides = [1, 1]} : vector<8x512xf32> to vector<8x128xf32>
    %76 = math.tanh %75 : vector<8x128xf32>
    %77 = vector.extract_strided_slice %62 {offsets = [0, 384], sizes = [8, 128], strides = [1, 1]} : vector<8x512xf32> to vector<8x128xf32>
    %78 = arith.negf %77 : vector<8x128xf32>
    %79 = math.exp %78 : vector<8x128xf32>
    %cst_37 = arith.constant 1.000000e+00 : f32
    %80 = vector.broadcast %cst_37 : f32 to vector<8x128xf32>
    %81 = arith.addf %80, %79 : vector<8x128xf32>
    %82 = arith.divf %80, %81 : vector<8x128xf32>
    %83 = arith.mulf %74, %15 : vector<8x128xf32>
    %84 = arith.mulf %68, %76 : vector<8x128xf32>
    %85 = arith.addf %83, %84 : vector<8x128xf32>
    %86 = math.tanh %85 : vector<8x128xf32>
    %87 = arith.mulf %82, %86 : vector<8x128xf32>
    %88 = vector.extract_strided_slice %58 {offsets = [8, 0], sizes = [8, 512], strides = [1, 1]} : vector<24x512xf32> to vector<8x512xf32>
    %89 = arith.truncf %87 : vector<8x128xf32> to vector<8x128xbf16>
    %cst_38 = arith.constant dense<0.000000e+00> : vector<8x512xf32>
    %90 = tpu.matmul %89, %53, %cst_38 {dimension_numbers = #tpu.dot_dimension_numbers<[1], [0], [0], [1], [0, 0, 1, 1], [], []>} : vector<8x128xbf16>, vector<128x512xbf16>, vector<8x512xf32> -> vector<8x512xf32>
    %91 = arith.addf %88, %90 : vector<8x512xf32>
    %92 = vector.extract_strided_slice %91 {offsets = [0, 0], sizes = [8, 128], strides = [1, 1]} : vector<8x512xf32> to vector<8x128xf32>
    %93 = arith.negf %92 : vector<8x128xf32>
    %94 = math.exp %93 : vector<8x128xf32>
    %cst_39 = arith.constant 1.000000e+00 : f32
    %95 = vector.broadcast %cst_39 : f32 to vector<8x128xf32>
    %96 = arith.addf %95, %94 : vector<8x128xf32>
    %97 = arith.divf %95, %96 : vector<8x128xf32>
    %98 = vector.extract_strided_slice %91 {offsets = [0, 128], sizes = [8, 128], strides = [1, 1]} : vector<8x512xf32> to vector<8x128xf32>
    %99 = arith.negf %98 : vector<8x128xf32>
    %100 = math.exp %99 : vector<8x128xf32>
    %cst_40 = arith.constant 1.000000e+00 : f32
    %101 = vector.broadcast %cst_40 : f32 to vector<8x128xf32>
    %102 = arith.addf %101, %100 : vector<8x128xf32>
    %103 = arith.divf %101, %102 : vector<8x128xf32>
    %104 = vector.extract_strided_slice %91 {offsets = [0, 256], sizes = [8, 128], strides = [1, 1]} : vector<8x512xf32> to vector<8x128xf32>
    %105 = math.tanh %104 : vector<8x128xf32>
    %106 = vector.extract_strided_slice %91 {offsets = [0, 384], sizes = [8, 128], strides = [1, 1]} : vector<8x512xf32> to vector<8x128xf32>
    %107 = arith.negf %106 : vector<8x128xf32>
    %108 = math.exp %107 : vector<8x128xf32>
    %cst_41 = arith.constant 1.000000e+00 : f32
    %109 = vector.broadcast %cst_41 : f32 to vector<8x128xf32>
    %110 = arith.addf %109, %108 : vector<8x128xf32>
    %111 = arith.divf %109, %110 : vector<8x128xf32>
    %112 = arith.mulf %103, %85 : vector<8x128xf32>
    %113 = arith.mulf %97, %105 : vector<8x128xf32>
    %114 = arith.addf %112, %113 : vector<8x128xf32>
    %115 = math.tanh %114 : vector<8x128xf32>
    %116 = arith.mulf %111, %115 : vector<8x128xf32>
    %117 = vector.extract_strided_slice %58 {offsets = [16, 0], sizes = [8, 512], strides = [1, 1]} : vector<24x512xf32> to vector<8x512xf32>
    %118 = arith.truncf %116 : vector<8x128xf32> to vector<8x128xbf16>
    %cst_42 = arith.constant dense<0.000000e+00> : vector<8x512xf32>
    %119 = tpu.matmul %118, %53, %cst_42 {dimension_numbers = #tpu.dot_dimension_numbers<[1], [0], [0], [1], [0, 0, 1, 1], [], []>} : vector<8x128xbf16>, vector<128x512xbf16>, vector<8x512xf32> -> vector<8x512xf32>
    %120 = arith.addf %117, %119 : vector<8x512xf32>
    %121 = vector.extract_strided_slice %120 {offsets = [0, 0], sizes = [8, 128], strides = [1, 1]} : vector<8x512xf32> to vector<8x128xf32>
    %122 = arith.negf %121 : vector<8x128xf32>
    %123 = math.exp %122 : vector<8x128xf32>
    %cst_43 = arith.constant 1.000000e+00 : f32
    %124 = vector.broadcast %cst_43 : f32 to vector<8x128xf32>
    %125 = arith.addf %124, %123 : vector<8x128xf32>
    %126 = arith.divf %124, %125 : vector<8x128xf32>
    %127 = vector.extract_strided_slice %120 {offsets = [0, 128], sizes = [8, 128], strides = [1, 1]} : vector<8x512xf32> to vector<8x128xf32>
    %128 = arith.negf %127 : vector<8x128xf32>
    %129 = math.exp %128 : vector<8x128xf32>
    %cst_44 = arith.constant 1.000000e+00 : f32
    %130 = vector.broadcast %cst_44 : f32 to vector<8x128xf32>
    %131 = arith.addf %130, %129 : vector<8x128xf32>
    %132 = arith.divf %130, %131 : vector<8x128xf32>
    %133 = vector.extract_strided_slice %120 {offsets = [0, 256], sizes = [8, 128], strides = [1, 1]} : vector<8x512xf32> to vector<8x128xf32>
    %134 = math.tanh %133 : vector<8x128xf32>
    %135 = vector.extract_strided_slice %120 {offsets = [0, 384], sizes = [8, 128], strides = [1, 1]} : vector<8x512xf32> to vector<8x128xf32>
    %136 = arith.negf %135 : vector<8x128xf32>
    %137 = math.exp %136 : vector<8x128xf32>
    %cst_45 = arith.constant 1.000000e+00 : f32
    %138 = vector.broadcast %cst_45 : f32 to vector<8x128xf32>
    %139 = arith.addf %138, %137 : vector<8x128xf32>
    %140 = arith.divf %138, %139 : vector<8x128xf32>
    %141 = arith.mulf %132, %114 : vector<8x128xf32>
    %142 = arith.mulf %126, %134 : vector<8x128xf32>
    %143 = arith.addf %141, %142 : vector<8x128xf32>
    %144 = math.tanh %143 : vector<8x128xf32>
    %145 = arith.mulf %140, %144 : vector<8x128xf32>
    %146 = arith.truncf %145 : vector<8x128xf32> to vector<8x128xbf16>
    %c0_46 = arith.constant 0 : index
    %c0_47 = arith.constant 0 : index
    %147 = vector.load %arg13[%c0_46, %c0_47] : memref<128x128xbf16, #tpu.memory_space<vmem>>, vector<128x128xbf16>
    %cst_48 = arith.constant dense<0.000000e+00> : vector<8x128xf32>
    %148 = tpu.matmul %146, %147, %cst_48 {dimension_numbers = #tpu.dot_dimension_numbers<[1], [0], [0], [1], [0, 0, 1, 1], [], []>} : vector<8x128xbf16>, vector<128x128xbf16>, vector<8x128xf32> -> vector<8x128xf32>
    %c0_49 = arith.constant 0 : index
    %c0_50 = arith.constant 0 : index
    %149 = vector.load %arg14[%c0_49, %c0_50] : memref<1x128xf32, #tpu.memory_space<vmem>>, vector<1x128xf32>
    %150 = vector.broadcast %149 : vector<1x128xf32> to vector<8x128xf32>
    %151 = arith.addf %148, %150 : vector<8x128xf32>
    %152 = arith.addf %50, %43 : vector<8x128xf32>
    %153 = arith.addf %152, %151 : vector<8x128xf32>
    %154 = arith.truncf %153 : vector<8x128xf32> to vector<8x128xbf16>
    %c0_51 = arith.constant 0 : index
    %c0_52 = arith.constant 0 : index
    %155 = vector.load %arg15[%c0_51, %c0_52] : memref<128x128xbf16, #tpu.memory_space<vmem>>, vector<128x128xbf16>
    %cst_53 = arith.constant dense<0.000000e+00> : vector<8x128xf32>
    %156 = tpu.matmul %154, %155, %cst_53 {dimension_numbers = #tpu.dot_dimension_numbers<[1], [0], [0], [1], [0, 0, 1, 1], [], []>} : vector<8x128xbf16>, vector<128x128xbf16>, vector<8x128xf32> -> vector<8x128xf32>
    %c0_54 = arith.constant 0 : index
    %c0_55 = arith.constant 0 : index
    %157 = vector.load %arg16[%c0_54, %c0_55] : memref<1x128xf32, #tpu.memory_space<vmem>>, vector<1x128xf32>
    %158 = vector.broadcast %157 : vector<1x128xf32> to vector<8x128xf32>
    %159 = arith.addf %156, %158 : vector<8x128xf32>
    %c0_56 = arith.constant 0 : index
    %c0_57 = arith.constant 0 : index
    %160 = vector.load %arg17[%c0_56, %c0_57] : memref<8x128xf32, #tpu.memory_space<vmem>>, vector<8x128xf32>
    tpu.vector_store %arg17[%c0_56, %c0_57], %159 {strides = array<i32>} : memref<8x128xf32, #tpu.memory_space<vmem>>, vector<8x128xf32>,
    return
  }
}

</mosaic_0001>

<bundles_post_ra>
// kernel: _forward_impl.1
= control target key start
LH: loop header
LB: loop body
LE: loop exit
PB: predicated region body
PF: predicated region fallthrough
CT: control target
= control target key end

     0   :  { %vm5939_vm0 = vmmov 0   ;;  %s7780_s2 = inlined_call_operand.vmem [shape: bf16[768,768], index: 2, kind: input, shape index: {}]   ;;  %s7781_s0 = inlined_call_operand.vmem [shape: bf16[48,768], index: 0, kind: input, shape index: {}]   ;;  %s7782_s4 = inlined_call_operand.vmem [shape: bf16[768,128], index: 4, kind: input, shape index: {}]   ;;  %s7783_s3 = inlined_call_operand.vmem [shape: f32[1,768], index: 3, kind: input, shape index: {}]   ;;  %s7784_s11 = inlined_call_operand.vmem [shape: bf16[128,512], index: 11, kind: input, shape index: {}]   ;;  %s7785_s8 = inlined_call_operand.vmem [shape: bf16[256,128], index: 8, kind: input, shape index: {}]   ;;  %s7786_s5 = inlined_call_operand.vmem [shape: f32[1,128], index: 5, kind: input, shape index: {}]   ;;  %s7787_s10 = inlined_call_operand.vmem [shape: bf16[128,512], index: 10, kind: input, shape index: {}]   ;;  %s7788_s12 = inlined_call_operand.vmem [shape: f32[1,512], index: 12, kind: input, shape index: {}]   ;;  %s7789_s13 = inlined_call_operand.vmem [shape: bf16[128,128], index: 13, kind: input, shape index: {}]   ;;  %s7790_s15 = inlined_call_operand.vmem [shape: bf16[128,128], index: 15, kind: input, shape index: {}]   ;;  %s7791_s1 = inlined_call_operand.vmem [shape: f32[8,128], index: 1, kind: input, shape index: {}]   ;;  %s7792_s6 = inlined_call_operand.vmem [shape: f32[1,128], index: 6, kind: input, shape index: {}]   ;;  %s7793_s9 = inlined_call_operand.vmem [shape: f32[1,128], index: 9, kind: input, shape index: {}]   ;;  %s7794_s7 = inlined_call_operand.vmem [shape: f32[1,128], index: 7, kind: input, shape index: {}]   ;;  %s7795_s14 = inlined_call_operand.vmem [shape: f32[1,128], index: 14, kind: input, shape index: {}]   ;;  %s7796_s16 = inlined_call_operand.vmem [shape: f32[1,128], index: 16, kind: input, shape index: {}]   ;;  %s7797_s17 = inlined_call_operand.vmem [shape: f32[8,128], index: 17, kind: output, shape index: {}]  }
   0x1   :  { %7800 = sst [smem:[#allocation2_spill]] %s7780_s2 }
   0x2   :  { %7801 = sst [smem:[#allocation3_spill]] %s7781_s0  ;;  %s7802_s26 = sld [smem:[#allocation2_spill]] }
   0x3   :  { %s7803_s20 = sld [smem:[#allocation3_spill]] }
   0x8   :  { %v5168_v0 = vld [vmem:[%s7802_s26 + $0x4] ss:$24 sps:$4 sm:$0xff]   ;;  %v5170_v1 = vld [vmem:[%s7802_s26] ss:$24 sps:$4 sm:$0xff]   ;;  %v5171_v2 = vld [vmem:[%s7802_s26 + $0x34] ss:$24 sps:$4 sm:$0xff]  }
   0x9   :  { %1925 = vmatprep.subr.bf16.mxu0 %v5168_v0  ;;  %v5173_v3 = vld [vmem:[%s7802_s26 + $0x30] ss:$24 sps:$4 sm:$0xff]   ;;  %v5174_v4 = vld [vmem:[%s7802_s26 + $0x64] ss:$24 sps:$4 sm:$0xff]   ;;  %v5176_v5 = vld [vmem:[%s7802_s26 + $0x60] ss:$24 sps:$4 sm:$0xff]  }
   0xa   :  { %1926 = vmatpush1.bf16.msra.mxu0 %v5170_v1  ;;  %v5177_v6 = vld [vmem:[%s7802_s26 + $0x94] ss:$24 sps:$4 sm:$0xff]   ;;  %v5179_v7 = vld [vmem:[%s7802_s26 + $0x90] ss:$24 sps:$4 sm:$0xff]   ;;  %v5180_v9 = vld [vmem:[%s7802_s26 + $0xc4] ss:$24 sps:$4 sm:$0xff]  }
   0xb   :  { %1927 = vmatprep.subr.bf16.mxu0 %v5171_v2  ;;  %v5192_v8 = vld [vmem:[%s7802_s26 + $0xc] ss:$24 sps:$4 sm:$0xff]   ;;  %v5196_v10 = vld [vmem:[%s7802_s26 + $0x8] ss:$24 sps:$4 sm:$0xff]   ;;  %v5198_v11 = vld [vmem:[%s7802_s26 + $0x3c] ss:$24 sps:$4 sm:$0xff]  }
   0xc   :  { %2114 = vmatprep.subr.bf16.mxu1 %v5192_v8  ;;  %v5182_v12 = vld [vmem:[%s7802_s26 + $0xc0] ss:$24 sps:$4 sm:$0xff]   ;;  %v5183_v13 = vld [vmem:[%s7802_s26 + $0xf4] ss:$24 sps:$4 sm:$0xff]   ;;  %v5185_v16 = vld [vmem:[%s7802_s26 + $0xf0] ss:$24 sps:$4 sm:$0xff]  }
   0xd   :  { %2115 = vmatpush1.bf16.msra.mxu1 %v5196_v10  ;;  %v5202_v14 = vld [vmem:[%s7802_s26 + $0x38] ss:$24 sps:$4 sm:$0xff]   ;;  %v5204_v15 = vld [vmem:[%s7802_s26 + $0x6c] ss:$24 sps:$4 sm:$0xff]   ;;  %v5208_v17 = vld [vmem:[%s7802_s26 + $0x68] ss:$24 sps:$4 sm:$0xff]  }
   0xe   :  { %1928 = vmatpush1.bf16.msra.mxu0 %v5173_v3  ;;  %2116 = vmatprep.subr.bf16.mxu1 %v5198_v11  ;;  %v5210_v18 = vld [vmem:[%s7802_s26 + $0x9c] ss:$24 sps:$4 sm:$0xff]   ;;  %v5214_v20 = vld [vmem:[%s7802_s26 + $0x98] ss:$24 sps:$4 sm:$0xff]   ;;  %v5216_v22 = vld [vmem:[%s7802_s26 + $0xcc] ss:$24 sps:$4 sm:$0xff]  }
   0xf   :  { %1929 = vmatprep.subr.bf16.mxu0 %v5174_v4  ;;  %v5186_v19 = vld [vmem:[%s7802_s26 + $0x124] ss:$24 sps:$4 sm:$0xff]   ;;  %v5188_v21 = vld [vmem:[%s7802_s26 + $0x120] ss:$24 sps:$4 sm:$0xff]   ;;  %v5189_v23 = vld [vmem:[%s7802_s26 + $0x154] ss:$24 sps:$4 sm:$0xff]  }
  0x10   :  { %v5191_v24 = vld [vmem:[%s7802_s26 + $0x150] ss:$24 sps:$4 sm:$0xff]   ;;  %v5222_v26 = vld [vmem:[%s7802_s26 + $0xfc] ss:$24 sps:$4 sm:$0xff]   ;;  %v5197_v29 = vld [vmem:[%s7802_s26 + $0x180] ss:$24 sps:$4 sm:$0xff]  }
  0x11   :  { %2117 = vmatpush1.bf16.msra.mxu1 %v5202_v14  ;;  %v5220_v25 = vld [vmem:[%s7802_s26 + $0xc8] ss:$24 sps:$4 sm:$0xff]   ;;  %v5194_v27 = vld [vmem:[%s7802_s26 + $0x184] ss:$24 sps:$4 sm:$0xff]   ;;  %v5226_v28 = vld [vmem:[%s7802_s26 + $0xf8] ss:$24 sps:$4 sm:$0xff]  }
  0x12   :  { %1930 = vmatpush1.bf16.msra.mxu0 %v5176_v5  ;;  %2118 = vmatprep.subr.bf16.mxu1 %v5204_v15  ;;  %v5228_v30 = vld [vmem:[%s7802_s26 + $0x12c] ss:$24 sps:$4 sm:$0xff]   ;;  %v5232_v33 = vld [vmem:[%s7802_s26 + $0x128] ss:$24 sps:$4 sm:$0xff]   ;;  %v5234_v35 = vld [vmem:[%s7802_s26 + $0x15c] ss:$24 sps:$4 sm:$0xff]  }
  0x13   :  { %1931 = vmatprep.subr.bf16.mxu0 %v5177_v6  ;;  %v5200_v31 = vld [vmem:[%s7802_s26 + $0x1b4] ss:$24 sps:$4 sm:$0xff]   ;;  %v5242_v32 = vld [vmem:[%s7803_s20 + $0x4] ss:$24 sps:$4 sm:$0xff]   ;;  %v5203_v34 = vld [vmem:[%s7802_s26 + $0x1b0] ss:$24 sps:$4 sm:$0xff]  }
  0x14   :  { %v5206_v36 = vld [vmem:[%s7802_s26 + $0x1e4] ss:$24 sps:$4 sm:$0xff]   ;;  %1957 = vmatprep.mubr.bf16.mxu0 %v5242_v32  ;;  %2146 = vmatprep.mubr.bf16.mxu1 %v5242_v32  ;;  %v5209_v37 = vld [vmem:[%s7802_s26 + $0x1e0] ss:$24 sps:$4 sm:$0xff]   ;;  %v5212_v40 = vld [vmem:[%s7802_s26 + $0x214] ss:$24 sps:$4 sm:$0xff]  }
  0x15   :  { %2119 = vmatpush1.bf16.msra.mxu1 %v5208_v17  ;;  %v5238_v38 = vld [vmem:[%s7802_s26 + $0x158] ss:$24 sps:$4 sm:$0xff]   ;;  %v5240_v39 = vld [vmem:[%s7802_s26 + $0x18c] ss:$24 sps:$4 sm:$0xff]   ;;  %v5247_v41 = vld [vmem:[%s7802_s26 + $0x188] ss:$24 sps:$4 sm:$0xff]  }
  0x16   :  { %1932 = vmatpush1.bf16.msra.mxu0 %v5179_v7  ;;  %2120 = vmatprep.subr.bf16.mxu1 %v5210_v18  ;;  %v5215_v42 = vld [vmem:[%s7802_s26 + $0x210] ss:$24 sps:$4 sm:$0xff]   ;;  %v5249_v43 = vld [vmem:[%s7802_s26 + $0x1bc] ss:$24 sps:$4 sm:$0xff]   ;;  %v5221_v45 = vld [vmem:[%s7802_s26 + $0x240] ss:$24 sps:$4 sm:$0xff]  }
  0x17   :  { %1933 = vmatprep.subr.bf16.mxu0 %v5180_v9  ;;  %v5218_v44 = vld [vmem:[%s7802_s26 + $0x244] ss:$24 sps:$4 sm:$0xff]   ;;  %v5254_v46 = vld [vmem:[%s7802_s26 + $0x1b8] ss:$24 sps:$4 sm:$0xff]   ;;  %v5224_v48 = vld [vmem:[%s7802_s26 + $0x274] ss:$24 sps:$4 sm:$0xff]  }
  0x18   :  { %v5255_v47 = vld [vmem:[%s7802_s26 + $0x1ec] ss:$24 sps:$4 sm:$0xff]   ;;  %v5260_v49 = vld [vmem:[%s7802_s26 + $0x1e8] ss:$24 sps:$4 sm:$0xff]   ;;  %v5261_v51 = vld [vmem:[%s7802_s26 + $0x21c] ss:$24 sps:$4 sm:$0xff]  }
  0x19   :  { %2121 = vmatpush1.bf16.msra.mxu1 %v5214_v20  ;;  %v5227_v50 = vld [vmem:[%s7802_s26 + $0x270] ss:$24 sps:$4 sm:$0xff]   ;;  %v5230_v52 = vld [vmem:[%s7802_s26 + $0x2a4] ss:$24 sps:$4 sm:$0xff]   ;;  %v5233_v54 = vld [vmem:[%s7802_s26 + $0x2a0] ss:$24 sps:$4 sm:$0xff]  }
  0x1a   :  { %1934 = vmatpush1.bf16.msra.mxu0 %v5182_v12  ;;  %2122 = vmatprep.subr.bf16.mxu1 %v5216_v22  ;;  %v5266_v53 = vld [vmem:[%s7802_s26 + $0x218] ss:$24 sps:$4 sm:$0xff]   ;;  %v5267_v55 = vld [vmem:[%s7802_s26 + $0x24c] ss:$24 sps:$4 sm:$0xff]   ;;  %v5272_v57 = vld [vmem:[%s7802_s26 + $0x248] ss:$24 sps:$4 sm:$0xff]  }
  0x1b   :  { %1935 = vmatprep.subr.bf16.mxu0 %v5183_v13  ;;  %v5236_v56 = vld [vmem:[%s7802_s26 + $0x2d4] ss:$24 sps:$4 sm:$0xff]   ;;  %v5239_v58 = vld [vmem:[%s7802_s26 + $0x2d0] ss:$24 sps:$4 sm:$0xff]   ;;  %v5246_v60 = vld [vmem:[%s7802_s26 + $0x304] ss:$24 sps:$4 sm:$0xff]  }
  0x1c   :  { %v5273_v59 = vld [vmem:[%s7802_s26 + $0x27c] ss:$24 sps:$4 sm:$0xff]   ;;  %v5248_v61 = vld [vmem:[%s7803_s20] ss:$24 sps:$4 sm:$0xff]   ;;  %v5279_v0 = vld [vmem:[%s7802_s26 + $0x2ac] ss:$24 sps:$4 sm:$0xff]  }
  0x1d   :  { %2123 = vmatpush1.bf16.msra.mxu1 %v5220_v25  ;;  %v5278_v62 = vld [vmem:[%s7802_s26 + $0x278] ss:$24 sps:$4 sm:$0xff]   ;;  %v5253_v1 = vld [vmem:[%s7802_s26 + $0x334] ss:$24 sps:$4 sm:$0xff]   ;;  %v5284_v3 = vld [vmem:[%s7802_s26 + $0x2a8] ss:$24 sps:$4 sm:$0xff]  }
  0x1e   :  { %1936 = vmatpush1.bf16.msra.mxu0 %v5185_v16  ;;  %2124 = vmatprep.subr.bf16.mxu1 %v5222_v26  ;;  %v5244_v63 = vld [vmem:[%s7802_s26 + $0x300] ss:$24 sps:$4 sm:$0xff]   ;;  %v5251_v2 = vld [vmem:[%s7802_s26 + $0x330] ss:$24 sps:$4 sm:$0xff]   ;;  %v5285_v4 = vld [vmem:[%s7802_s26 + $0x2dc] ss:$24 sps:$4 sm:$0xff]  }
  0x1f   :  { %1937 = vmatprep.subr.bf16.mxu0 %v5186_v19  ;;  %v5318_v5 = vld [vmem:[%s7803_s20 + $0x34] ss:$24 sps:$4 sm:$0xff]   ;;  %v5259_v6 = vld [vmem:[%s7802_s26 + $0x364] ss:$24 sps:$4 sm:$0xff]   ;;  %v5290_v7 = vld [vmem:[%s7802_s26 + $0x2d8] ss:$24 sps:$4 sm:$0xff]  }
  0x20   :  { %v5323_v8 = vld [vmem:[%s7803_s20 + $0x30] ss:$24 sps:$4 sm:$0xff]   ;;  %v5257_v9 = vld [vmem:[%s7802_s26 + $0x360] ss:$24 sps:$4 sm:$0xff]   ;;  %v5293_v10 = vld [vmem:[%s7802_s26 + $0x30c] ss:$24 sps:$4 sm:$0xff]  }
  0x21   :  { %2125 = vmatpush1.bf16.msra.mxu1 %v5226_v28  ;;  %v5265_v11 = vld [vmem:[%s7802_s26 + $0x394] ss:$24 sps:$4 sm:$0xff]   ;;  %v5291_v12 = vld [vmem:[%s7802_s26 + $0x308] ss:$24 sps:$4 sm:$0xff]   ;;  %v5333_v13 = vld [vmem:[%s7803_s20 + $0x64] ss:$24 sps:$4 sm:$0xff]  }
  0x22   :  { %1938 = vmatpush1.bf16.msra.mxu0 %v5188_v21  ;;  %2126 = vmatprep.subr.bf16.mxu1 %v5228_v30  ;;  %v5263_v14 = vld [vmem:[%s7802_s26 + $0x390] ss:$24 sps:$4 sm:$0xff]   ;;  %v5299_v15 = vld [vmem:[%s7802_s26 + $0x33c] ss:$24 sps:$4 sm:$0xff]   ;;  %v5338_v18 = vld [vmem:[%s7803_s20 + $0x60] ss:$24 sps:$4 sm:$0xff]  }
  0x23   :  { %1939 = vmatprep.subr.bf16.mxu0 %v5189_v23  ;;  %v5271_v16 = vld [vmem:[%s7802_s26 + $0x3c4] ss:$24 sps:$4 sm:$0xff]   ;;  %v5297_v17 = vld [vmem:[%s7802_s26 + $0x338] ss:$24 sps:$4 sm:$0xff]   ;;  %v5277_v21 = vld [vmem:[%s7802_s26 + $0x3f4] ss:$24 sps:$4 sm:$0xff]  }
  0x24   :  { %v5269_v19 = vld [vmem:[%s7802_s26 + $0x3c0] ss:$24 sps:$4 sm:$0xff]   ;;  %v5305_v20 = vld [vmem:[%s7802_s26 + $0x36c] ss:$24 sps:$4 sm:$0xff]   ;;  %v5311_v25 = vld [vmem:[%s7802_s26 + $0x39c] ss:$24 sps:$4 sm:$0xff]  }
  0x25   :  { %2127 = vmatpush1.bf16.msra.mxu1 %v5232_v33  ;;  %v5350_v22 = vld [vmem:[%s7803_s20 + $0xc] ss:$24 sps:$4 sm:$0xff]   ;;  %v5303_v23 = vld [vmem:[%s7802_s26 + $0x368] ss:$24 sps:$4 sm:$0xff]   ;;  %v5326_v33 = vld [vmem:[%s7802_s26 + $0x3fc] ss:$24 sps:$4 sm:$0xff]  }
  0x26   :  { %1940 = vmatpush1.bf16.msra.mxu0 %v5191_v24  ;;  %2128 = vmatprep.subr.bf16.mxu1 %v5234_v35  ;;  %v5275_v24 = vld [vmem:[%s7802_s26 + $0x3f0] ss:$24 sps:$4 sm:$0xff]   ;;  %v5283_v26 = vld [vmem:[%s7802_s26 + $0x424] ss:$24 sps:$4 sm:$0xff]   ;;  %v5281_v28 = vld [vmem:[%s7802_s26 + $0x420] ss:$24 sps:$4 sm:$0xff]  }
  0x27   :  { %1941 = vmatprep.subr.bf16.mxu0 %v5194_v27  ;;  %v5309_v27 = vld [vmem:[%s7802_s26 + $0x398] ss:$24 sps:$4 sm:$0xff]   ;;  %v5289_v30 = vld [vmem:[%s7802_s26 + $0x454] ss:$24 sps:$4 sm:$0xff]  }
  0x28   :  { %v5287_v32 = vld [vmem:[%s7802_s26 + $0x450] ss:$24 sps:$4 sm:$0xff]  }
  0x29   :  { %2129 = vmatpush1.bf16.msra.mxu1 %v5238_v38  ;;  %v5324_v35 = vld [vmem:[%s7802_s26 + $0x3f8] ss:$24 sps:$4 sm:$0xff]   ;;  %v5302_v38 = vld [vmem:[%s7802_s26 + $0x4b4] ss:$24 sps:$4 sm:$0xff]  }
  0x2a   :  { %1942 = vmatpush1.bf16.msra.mxu0 %v5197_v29  ;;  %2130 = vmatprep.subr.bf16.mxu1 %v5240_v39  ;;  %v5317_v29 = vld [vmem:[%s7802_s26 + $0x3cc] ss:$24 sps:$4 sm:$0xff]   ;;  %v5330_v39 = vld [vmem:[%s7802_s26 + $0x428] ss:$24 sps:$4 sm:$0xff]  }
  0x2b   :  { %1943 = vmatprep.subr.bf16.mxu0 %v5200_v31  ;;  %v5315_v31 = vld [vmem:[%s7802_s26 + $0x3c8] ss:$24 sps:$4 sm:$0xff]  }
  0x2d   :  { %2131 = vmatpush1.bf16.msra.mxu1 %v5247_v41  ;;  %v5341_v41 = vld [vmem:[%s7802_s26 + $0x45c] ss:$24 sps:$4 sm:$0xff]  }
  0x2e   :  { %1944 = vmatpush1.bf16.msra.mxu0 %v5203_v34  ;;  %2132 = vmatprep.subr.bf16.mxu1 %v5249_v43  ;;  %v5296_v34 = vld [vmem:[%s7802_s26 + $0x484] ss:$24 sps:$4 sm:$0xff]   ;;  %v5339_v43 = vld [vmem:[%s7802_s26 + $0x458] ss:$24 sps:$4 sm:$0xff]  }
  0x2f   :  { %1945 = vmatprep.subr.bf16.mxu0 %v5206_v36  ;;  %v5294_v36 = vld [vmem:[%s7802_s26 + $0x480] ss:$24 sps:$4 sm:$0xff]  }
  0x31   :  { %2133 = vmatpush1.bf16.msra.mxu1 %v5254_v46  ;;  %v5314_v46 = vld [vmem:[%s7802_s26 + $0x514] ss:$24 sps:$4 sm:$0xff]  }
  0x32   :  { %1946 = vmatpush1.bf16.msra.mxu0 %v5209_v37  ;;  %2134 = vmatprep.subr.bf16.mxu1 %v5255_v47  ;;  %v5332_v37 = vld [vmem:[%s7802_s26 + $0x42c] ss:$24 sps:$4 sm:$0xff]   ;;  %v5345_v47 = vld [vmem:[%s7802_s26 + $0x488] ss:$24 sps:$4 sm:$0xff]  }
  0x33   :  { %1947 = vmatprep.subr.bf16.mxu0 %v5212_v40  ;;  %v5300_v40 = vld [vmem:[%s7802_s26 + $0x4b0] ss:$24 sps:$4 sm:$0xff]  }
  0x35   :  { %2135 = vmatpush1.bf16.msra.mxu1 %v5260_v49  ;;  %v5356_v49 = vld [vmem:[%s7802_s26 + $0x4bc] ss:$24 sps:$4 sm:$0xff]  }
  0x36   :  { %1948 = vmatpush1.bf16.msra.mxu0 %v5215_v42  ;;  %2136 = vmatprep.subr.bf16.mxu1 %v5261_v51  ;;  %v5308_v42 = vld [vmem:[%s7802_s26 + $0x4e4] ss:$24 sps:$4 sm:$0xff]   ;;  %v5354_v51 = vld [vmem:[%s7802_s26 + $0x4b8] ss:$24 sps:$4 sm:$0xff]  }
  0x37   :  { %1949 = vmatprep.subr.bf16.mxu0 %v5218_v44  ;;  %v5306_v44 = vld [vmem:[%s7802_s26 + $0x4e0] ss:$24 sps:$4 sm:$0xff]  }
  0x39   :  { %2137 = vmatpush1.bf16.msra.mxu1 %v5266_v53  ;;  %v5362_v53 = vld [vmem:[%s7802_s26 + $0x4ec] ss:$24 sps:$4 sm:$0xff]  }
  0x3a   :  { %1950 = vmatpush1.bf16.msra.mxu0 %v5221_v45  ;;  %2138 = vmatprep.subr.bf16.mxu1 %v5267_v55  ;;  %v5347_v45 = vld [vmem:[%s7802_s26 + $0x48c] ss:$24 sps:$4 sm:$0xff]   ;;  %v5360_v55 = vld [vmem:[%s7802_s26 + $0x4e8] ss:$24 sps:$4 sm:$0xff]  }
  0x3b   :  { %1951 = vmatprep.subr.bf16.mxu0 %v5224_v48  ;;  %v5312_v48 = vld [vmem:[%s7802_s26 + $0x510] ss:$24 sps:$4 sm:$0xff]  }
  0x3d   :  { %2139 = vmatpush1.bf16.msra.mxu1 %v5272_v57  ;;  %v5368_v57 = vld [vmem:[%s7802_s26 + $0x51c] ss:$24 sps:$4 sm:$0xff]  }
  0x3e   :  { %1952 = vmatpush1.bf16.msra.mxu0 %v5227_v50  ;;  %2140 = vmatprep.subr.bf16.mxu1 %v5273_v59  ;;  %v5322_v50 = vld [vmem:[%s7802_s26 + $0x544] ss:$24 sps:$4 sm:$0xff]   ;;  %v5335_v59 = vld [vmem:[%s7802_s26 + $0x5a0] ss:$24 sps:$4 sm:$0xff]  }
  0x3f   :  { %1953 = vmatprep.subr.bf16.mxu0 %v5230_v52  ;;  %v5320_v52 = vld [vmem:[%s7802_s26 + $0x540] ss:$24 sps:$4 sm:$0xff]  }
  0x41   :  { %2141 = vmatpush1.bf16.msra.mxu1 %v5278_v62  ;;  %v5344_v62 = vld [vmem:[%s7802_s26 + $0x5d4] ss:$24 sps:$4 sm:$0xff]  }
  0x42   :  { %1954 = vmatpush1.bf16.msra.mxu0 %v5233_v54  ;;  %2142 = vmatprep.subr.bf16.mxu1 %v5279_v0  ;;  %v5329_v54 = vld [vmem:[%s7802_s26 + $0x574] ss:$24 sps:$4 sm:$0xff]   ;;  %v5342_v0 = vld [vmem:[%s7802_s26 + $0x5d0] ss:$24 sps:$4 sm:$0xff]  }
  0x43   :  { %1955 = vmatprep.subr.bf16.mxu0 %v5236_v56  ;;  %v5327_v56 = vld [vmem:[%s7802_s26 + $0x570] ss:$24 sps:$4 sm:$0xff]  }
  0x45   :  { %2143 = vmatpush1.bf16.msra.mxu1 %v5284_v3  ;;  %v5348_v3 = vld [vmem:[%s7803_s20 + $0x8] ss:$24 sps:$4 sm:$0xff]  }
  0x46   :  { %1956 = vmatpush1.bf16.msra.mxu0 %v5239_v58  ;;  %2144 = vmatprep.subr.bf16.mxu1 %v5285_v4  ;;  %v5337_v58 = vld [vmem:[%s7802_s26 + $0x5a4] ss:$24 sps:$4 sm:$0xff]   ;;  %v5351_v4 = vld [vmem:[%s7802_s26 + $0x600] ss:$24 sps:$4 sm:$0xff]  }
  0x47   :  { %1988 = vmatprep.subr.bf16.mxu0 %v5246_v60  ;;  %v5366_v60 = vld [vmem:[%s7802_s26 + $0x518] ss:$24 sps:$4 sm:$0xff]  }
  0x49   :  { %1958 = vmatmul.mubr.bf16.vlgmr.msra.gmra.mrb[0].mxu0 %v5248_v61  ;;  %2145 = vmatpush1.bf16.msra.mxu1 %v5290_v7  ;;  %v5386_v7 = vld [vmem:[%s7802_s26 + $0x5ac] ss:$24 sps:$4 sm:$0xff]  }
  0x4a   :  { %1989 = vmatpush1.bf16.msra.mxu0 %v5244_v63  ;;  %1967 = vmatprep.mubr.bf16.mxu0 %v5318_v5  ;;  %v5372_v63 = vld [vmem:[%s7802_s26 + $0x548] ss:$24 sps:$4 sm:$0xff]  }
  0x4b   :  { %1990 = vmatprep.subr.bf16.mxu0 %v5253_v1  ;;  %2177 = vmatprep.subr.bf16.mxu1 %v5293_v10  ;;  %v5380_v1 = vld [vmem:[%s7802_s26 + $0x57c] ss:$24 sps:$4 sm:$0xff]   ;;  %v5357_v10 = vld [vmem:[%s7802_s26 + $0x630] ss:$24 sps:$4 sm:$0xff]  }
  0x4c   :  { %2147 = vmatmul.mubr.bf16.vlgmr.msra.gmra.mrb[0].mxu1 %v5248_v61  ;;  %v5374_v61 = vld [vmem:[%s7802_s26 + $0x54c] ss:$24 sps:$4 sm:$0xff]  }
  0x4d   :  { %2178 = vmatpush1.bf16.msra.mxu1 %v5291_v12  ;;  %2156 = vmatprep.mubr.bf16.mxu1 %v5318_v5  ;;  %v5378_v5 = vld [vmem:[%s7802_s26 + $0x578] ss:$24 sps:$4 sm:$0xff]   ;;  %v5365_v12 = vld [vmem:[%s7802_s26 + $0x664] ss:$24 sps:$4 sm:$0xff]  }
  0x4e   :  { %1991 = vmatpush1.bf16.msra.mxu0 %v5251_v2  ;;  %2179 = vmatprep.subr.bf16.mxu1 %v5299_v15  ;;  %v5353_v2 = vld [vmem:[%s7802_s26 + $0x604] ss:$24 sps:$4 sm:$0xff]   ;;  %v5425_v15 = vld [vmem:[%s7803_s20 + $0x38] ss:$24 sps:$4 sm:$0xff]  }
  0x4f   :  { %1992 = vmatprep.subr.bf16.mxu0 %v5259_v6  ;;  %v5359_v6 = vld [vmem:[%s7802_s26 + $0x634] ss:$24 sps:$4 sm:$0xff]  }
  0x51   :  { %1968 = vmatmul.mubr.bf16.gmra.mrb[4].mxu0 %v5323_v8  ;;  %2180 = vmatpush1.bf16.msra.mxu1 %v5297_v17  ;;  %v5398_v17 = vld [vmem:[%s7802_s26 + $0x60c] ss:$24 sps:$4 sm:$0xff]  }
  0x52   :  { %1993 = vmatpush1.bf16.msra.mxu0 %v5257_v9  ;;  %1977 = vmatprep.mubr.bf16.mxu0 %v5333_v13  ;;  %v5384_v9 = vld [vmem:[%s7802_s26 + $0x5a8] ss:$24 sps:$4 sm:$0xff]  }
  0x53   :  { %1994 = vmatprep.subr.bf16.mxu0 %v5265_v11  ;;  %2181 = vmatprep.subr.bf16.mxu1 %v5305_v20  ;;  %v5392_v11 = vld [vmem:[%s7802_s26 + $0x5dc] ss:$24 sps:$4 sm:$0xff]   ;;  %v5396_v20 = vld [vmem:[%s7802_s26 + $0x608] ss:$24 sps:$4 sm:$0xff]  }
  0x54   :  { %2157 = vmatmul.mubr.bf16.gmra.mrb[4].mxu1 %v5323_v8  ;;  %v5420_v8 = vld [vmem:[%s7803_s20 + $0x3c] ss:$24 sps:$4 sm:$0xff]  }
  0x55   :  { %2182 = vmatpush1.bf16.msra.mxu1 %v5303_v23  ;;  %2166 = vmatprep.mubr.bf16.mxu1 %v5333_v13  ;;  %v5363_v13 = vld [vmem:[%s7802_s26 + $0x660] ss:$24 sps:$4 sm:$0xff]  }
  0x56   :  { %1995 = vmatpush1.bf16.msra.mxu0 %v5263_v14  ;;  %2183 = vmatprep.subr.bf16.mxu1 %v5311_v25  ;;  %v5390_v14 = vld [vmem:[%s7802_s26 + $0x5d8] ss:$24 sps:$4 sm:$0xff]   ;;  %v6492_v25 = vld [vmem:[%s7803_s20 + $0x68] ss:$24 sps:$4 sm:$0xff]  }
  0x57   :  { %1996 = vmatprep.subr.bf16.mxu0 %v5271_v16  ;;  %v5371_v16 = vld [vmem:[%s7802_s26 + $0x694] ss:$24 sps:$4 sm:$0xff]   ;;  %v5375_v23 = vld [vmem:[%s7802_s26 + $0x6c0] ss:$24 sps:$4 sm:$0xff]  }
  0x59   :  { %1978 = vmatmul.mubr.bf16.gmra.mrb[8].mxu0 %v5338_v18  ;;  %2184 = vmatpush1.bf16.msra.mxu1 %v5309_v27  ;;  %v5410_v27 = vld [vmem:[%s7802_s26 + $0x66c] ss:$24 sps:$4 sm:$0xff]  }
  0x5a   :  { %1997 = vmatpush1.bf16.msra.mxu0 %v5269_v19  ;;  %2020 = vmatprep.mubr.bf16.mxu0 %v5350_v22  ;;  %v5369_v19 = vld [vmem:[%s7802_s26 + $0x690] ss:$24 sps:$4 sm:$0xff]  }
  0x5b   :  { %1998 = vmatprep.subr.bf16.mxu0 %v5277_v21  ;;  %2185 = vmatprep.subr.bf16.mxu1 %v5317_v29  ;;  %v5404_v21 = vld [vmem:[%s7802_s26 + $0x63c] ss:$24 sps:$4 sm:$0xff]   ;;  %v5408_v29 = vld [vmem:[%s7802_s26 + $0x668] ss:$24 sps:$4 sm:$0xff]  }
  0x5c   :  { %2167 = vmatmul.mubr.bf16.gmra.mrb[8].mxu1 %v5338_v18  ;;  %v5435_v18 = vld [vmem:[%s7803_s20 + $0x6c] ss:$24 sps:$4 sm:$0xff]  }
  0x5d   :  { %2186 = vmatpush1.bf16.msra.mxu1 %v5315_v31  ;;  %2209 = vmatprep.mubr.bf16.mxu1 %v5350_v22  ;;  %v5377_v22 = vld [vmem:[%s7802_s26 + $0x6c4] ss:$24 sps:$4 sm:$0xff]  }
  0x5e   :  { %1999 = vmatpush1.bf16.msra.mxu0 %v5275_v24  ;;  %2187 = vmatprep.subr.bf16.mxu1 %v5326_v33  ;;  %v5402_v24 = vld [vmem:[%s7802_s26 + $0x638] ss:$24 sps:$4 sm:$0xff]   ;;  %v5416_v31 = vld [vmem:[%s7802_s26 + $0x69c] ss:$24 sps:$4 sm:$0xff]  }
  0x5f   :  { %2000 = vmatprep.subr.bf16.mxu0 %v5283_v26  ;;  %v5383_v26 = vld [vmem:[%s7802_s26 + $0x6f4] ss:$24 sps:$4 sm:$0xff]   ;;  %v5414_v33 = vld [vmem:[%s7802_s26 + $0x698] ss:$24 sps:$4 sm:$0xff]  }
  0x61   :  { %2188 = vmatpush1.bf16.msra.mxu1 %v5324_v35  ;;  %v5424_v35 = vld [vmem:[%s7802_s26 + $0x6cc] ss:$24 sps:$4 sm:$0xff]  }
  0x62   :  { %2001 = vmatpush1.bf16.msra.mxu0 %v5281_v28  ;;  %2189 = vmatprep.subr.bf16.mxu1 %v5332_v37  ;;  %v6503_v28 = vld [vmem:[%s7803_s20 + $0x14] ss:$24 sps:$4 sm:$0xff]   ;;  %v5422_v37 = vld [vmem:[%s7802_s26 + $0x6c8] ss:$24 sps:$4 sm:$0xff]  }
  0x63   :  { %2002 = vmatprep.subr.bf16.mxu0 %v5289_v30  ;;  %v5381_v30 = vld [vmem:[%s7802_s26 + $0x6f0] ss:$24 sps:$4 sm:$0xff]  }
  0x65   :  { %2190 = vmatpush1.bf16.msra.mxu1 %v5330_v39  ;;  %v5431_v39 = vld [vmem:[%s7802_s26 + $0x6fc] ss:$24 sps:$4 sm:$0xff]  }
  0x66   :  { %2003 = vmatpush1.bf16.msra.mxu0 %v5287_v32  ;;  %2191 = vmatprep.subr.bf16.mxu1 %v5341_v41  ;;  %v5389_v32 = vld [vmem:[%s7802_s26 + $0x724] ss:$24 sps:$4 sm:$0xff]   ;;  %v5429_v41 = vld [vmem:[%s7802_s26 + $0x6f8] ss:$24 sps:$4 sm:$0xff]  }
  0x67   :  { %2004 = vmatprep.subr.bf16.mxu0 %v5296_v34  ;;  %v5387_v34 = vld [vmem:[%s7802_s26 + $0x720] ss:$24 sps:$4 sm:$0xff]  }
  0x69   :  { %2192 = vmatpush1.bf16.msra.mxu1 %v5339_v43  ;;  %v5439_v43 = vld [vmem:[%s7802_s26 + $0x72c] ss:$24 sps:$4 sm:$0xff]  }
  0x6a   :  { %2005 = vmatpush1.bf16.msra.mxu0 %v5294_v36  ;;  %2193 = vmatprep.subr.bf16.mxu1 %v5347_v45  ;;  %v5395_v36 = vld [vmem:[%s7802_s26 + $0x754] ss:$24 sps:$4 sm:$0xff]   ;;  %v5437_v45 = vld [vmem:[%s7802_s26 + $0x728] ss:$24 sps:$4 sm:$0xff]  }
  0x6b   :  { %2006 = vmatprep.subr.bf16.mxu0 %v5302_v38  ;;  %v5393_v38 = vld [vmem:[%s7802_s26 + $0x750] ss:$24 sps:$4 sm:$0xff]  }
  0x6d   :  { %2194 = vmatpush1.bf16.msra.mxu1 %v5345_v47  ;;  %v5446_v47 = vld [vmem:[%s7802_s26 + $0x75c] ss:$24 sps:$4 sm:$0xff]  }
  0x6e   :  { %2007 = vmatpush1.bf16.msra.mxu0 %v5300_v40  ;;  %2195 = vmatprep.subr.bf16.mxu1 %v5356_v49  ;;  %v5401_v40 = vld [vmem:[%s7802_s26 + $0x784] ss:$24 sps:$4 sm:$0xff]   ;;  %v5444_v49 = vld [vmem:[%s7802_s26 + $0x758] ss:$24 sps:$4 sm:$0xff]  }
  0x6f   :  { %2008 = vmatprep.subr.bf16.mxu0 %v5308_v42  ;;  %v5399_v42 = vld [vmem:[%s7802_s26 + $0x780] ss:$24 sps:$4 sm:$0xff]  }
  0x71   :  { %2196 = vmatpush1.bf16.msra.mxu1 %v5354_v51  ;;  %v5455_v51 = vld [vmem:[%s7802_s26 + $0x78c] ss:$24 sps:$4 sm:$0xff]  }
  0x72   :  { %2009 = vmatpush1.bf16.msra.mxu0 %v5306_v44  ;;  %2197 = vmatprep.subr.bf16.mxu1 %v5362_v53  ;;  %v5407_v44 = vld [vmem:[%s7802_s26 + $0x7b4] ss:$24 sps:$4 sm:$0xff]   ;;  %v5453_v53 = vld [vmem:[%s7802_s26 + $0x788] ss:$24 sps:$4 sm:$0xff]  }
  0x73   :  { %2010 = vmatprep.subr.bf16.mxu0 %v5314_v46  ;;  %v5405_v46 = vld [vmem:[%s7802_s26 + $0x7b0] ss:$24 sps:$4 sm:$0xff]  }
  0x75   :  { %2198 = vmatpush1.bf16.msra.mxu1 %v5360_v55  ;;  %v5461_v55 = vld [vmem:[%s7802_s26 + $0x7bc] ss:$24 sps:$4 sm:$0xff]  }
  0x76   :  { %2011 = vmatpush1.bf16.msra.mxu0 %v5312_v48  ;;  %2199 = vmatprep.subr.bf16.mxu1 %v5368_v57  ;;  %v5413_v48 = vld [vmem:[%s7802_s26 + $0x7e4] ss:$24 sps:$4 sm:$0xff]   ;;  %v5459_v57 = vld [vmem:[%s7802_s26 + $0x7b8] ss:$24 sps:$4 sm:$0xff]  }
  0x77   :  { %2012 = vmatprep.subr.bf16.mxu0 %v5322_v50  ;;  %v5411_v50 = vld [vmem:[%s7802_s26 + $0x7e0] ss:$24 sps:$4 sm:$0xff]  }
  0x79   :  { %2200 = vmatpush1.bf16.msra.mxu1 %v5366_v60  ;;  %v5434_v60 = vld [vmem:[%s7802_s26 + $0x874] ss:$24 sps:$4 sm:$0xff]  }
  0x7a   :  { %2013 = vmatpush1.bf16.msra.mxu0 %v5320_v52  ;;  %2201 = vmatprep.subr.bf16.mxu1 %v5374_v61  ;;  %v5419_v52 = vld [vmem:[%s7802_s26 + $0x814] ss:$24 sps:$4 sm:$0xff]   ;;  %v5432_v61 = vld [vmem:[%s7802_s26 + $0x870] ss:$24 sps:$4 sm:$0xff]  }
  0x7b   :  { %2014 = vmatprep.subr.bf16.mxu0 %v5329_v54  ;;  %v5417_v54 = vld [vmem:[%s7802_s26 + $0x810] ss:$24 sps:$4 sm:$0xff]  }
  0x7d   :  { %2202 = vmatpush1.bf16.msra.mxu1 %v5372_v63  ;;  %v5443_v63 = vld [vmem:[%s7802_s26 + $0x8a4] ss:$24 sps:$4 sm:$0xff]  }
  0x7e   :  { %2015 = vmatpush1.bf16.msra.mxu0 %v5327_v56  ;;  %2203 = vmatprep.subr.bf16.mxu1 %v5380_v1  ;;  %v5428_v56 = vld [vmem:[%s7802_s26 + $0x844] ss:$24 sps:$4 sm:$0xff]   ;;  %v5474_v1 = vld [vmem:[%s7802_s26 + $0x818] ss:$24 sps:$4 sm:$0xff]  }
  0x7f   :  { %2016 = vmatprep.subr.bf16.mxu0 %v5337_v58  ;;  %v5426_v58 = vld [vmem:[%s7802_s26 + $0x840] ss:$24 sps:$4 sm:$0xff]  }
  0x81   :  { %2204 = vmatpush1.bf16.msra.mxu1 %v5378_v5  ;;  %v5482_v5 = vld [vmem:[%s7802_s26 + $0x848] ss:$24 sps:$4 sm:$0xff]  }
  0x82   :  { %2017 = vmatpush1.bf16.msra.mxu0 %v5335_v59  ;;  %2205 = vmatprep.subr.bf16.mxu1 %v5386_v7  ;;  %v5469_v59 = vld [vmem:[%s7802_s26 + $0x7ec] ss:$24 sps:$4 sm:$0xff]  }
  0x83   :  { %2018 = vmatprep.subr.bf16.mxu0 %v5344_v62  ;;  %v5467_v62 = vld [vmem:[%s7802_s26 + $0x7e8] ss:$24 sps:$4 sm:$0xff]   ;;  %v5458_v7 = vld [vmem:[%s7802_s26 + $0x14] ss:$24 sps:$4 sm:$0xff]  }
  0x85   :  { %2206 = vmatpush1.bf16.msra.mxu1 %v5384_v9  ;;  %v6644_v9 = vld [vmem:[%s7803_s20 + $0x10] ss:$24 sps:$4 sm:$0xff]  }
  0x86   :  { %2019 = vmatpush1.bf16.msra.mxu0 %v5342_v0  ;;  %2207 = vmatprep.subr.bf16.mxu1 %v5392_v11  ;;  %v5476_v0 = vld [vmem:[%s7802_s26 + $0x81c] ss:$24 sps:$4 sm:$0xff]   ;;  %v5456_v11 = vld [vmem:[%s7802_s26 + $0x10] ss:$24 sps:$4 sm:$0xff]  }
  0x87   :  { %2051 = vmatprep.subr.bf16.mxu0 %v5353_v2  ;;  %v5441_v2 = vld [vmem:[%s7802_s26 + $0x8a0] ss:$24 sps:$4 sm:$0xff]  }
  0x89   :  { %2021 = vmatmul.mubr.bf16.vlgmr.msra.gmra.mrb[0].mxu0 %v5348_v3  ;;  %2208 = vmatpush1.bf16.msra.mxu1 %v5390_v14  ;;  %v5497_v14 = vld [vmem:[%s7802_s26 + $0x8ac] ss:$24 sps:$4 sm:$0xff]  }
  0x8a   :  { %2052 = vmatpush1.bf16.msra.mxu0 %v5351_v4  ;;  %2030 = vmatprep.mubr.bf16.mxu0 %v5420_v8  ;;  %v5484_v4 = vld [vmem:[%s7802_s26 + $0x84c] ss:$24 sps:$4 sm:$0xff]  }
  0x8b   :  { %2053 = vmatprep.subr.bf16.mxu0 %v5359_v6  ;;  %2240 = vmatprep.subr.bf16.mxu1 %v5398_v17  ;;  %v5447_v6 = vld [vmem:[%s7802_s26 + $0x8d0] ss:$24 sps:$4 sm:$0xff]   ;;  %v5503_v17 = vld [vmem:[%s7802_s26 + $0x8dc] ss:$24 sps:$4 sm:$0xff]  }
  0x8c   :  { %2210 = vmatmul.mubr.bf16.vlgmr.msra.gmra.mrb[0].mxu1 %v5348_v3  ;;  %v5449_v3 = vld [vmem:[%s7802_s26 + $0x8d4] ss:$24 sps:$4 sm:$0xff]  }
  0x8d   :  { %2241 = vmatpush1.bf16.msra.mxu1 %v5396_v20  ;;  %2219 = vmatprep.mubr.bf16.mxu1 %v5420_v8  ;;  %v5491_v8 = vld [vmem:[%s7802_s26 + $0x87c] ss:$24 sps:$4 sm:$0xff]   ;;  %v5501_v20 = vld [vmem:[%s7802_s26 + $0x8d8] ss:$24 sps:$4 sm:$0xff]  }
  0x8e   :  { %2054 = vmatpush1.bf16.msra.mxu0 %v5357_v10  ;;  %2242 = vmatprep.subr.bf16.mxu1 %v5404_v21  ;;  %v5489_v10 = vld [vmem:[%s7802_s26 + $0x878] ss:$24 sps:$4 sm:$0xff]  }
  0x8f   :  { %2055 = vmatprep.subr.bf16.mxu0 %v5365_v12  ;;  %v5464_v12 = vld [vmem:[%s7802_s26 + $0x44] ss:$24 sps:$4 sm:$0xff]   ;;  %v5471_v21 = vld [vmem:[%s7802_s26 + $0x70] ss:$24 sps:$4 sm:$0xff]  }
  0x91   :  { %2031 = vmatmul.mubr.bf16.gmra.mrb[4].mxu0 %v5425_v15  ;;  %2243 = vmatpush1.bf16.msra.mxu1 %v5402_v24  ;;  %v5477_v24 = vld [vmem:[%s7802_s26 + $0xa0] ss:$24 sps:$4 sm:$0xff]  }
  0x92   :  { %2056 = vmatpush1.bf16.msra.mxu0 %v5363_v13  ;;  %2040 = vmatprep.mubr.bf16.mxu0 %v5435_v18  ;;  %v6658_v13 = vld [vmem:[%s7803_s20 + $0x44] ss:$24 sps:$4 sm:$0xff]  }
  0x93   :  { %2057 = vmatprep.subr.bf16.mxu0 %v5371_v16  ;;  %2244 = vmatprep.subr.bf16.mxu1 %v5410_v27  ;;  %v5462_v16 = vld [vmem:[%s7802_s26 + $0x40] ss:$24 sps:$4 sm:$0xff]   ;;  %v6708_v27 = vld [vmem:[%s7803_s20 + $0x70] ss:$24 sps:$4 sm:$0xff]  }
  0x94   :  { %2220 = vmatmul.mubr.bf16.gmra.mrb[4].mxu1 %v5425_v15  ;;  %v5495_v15 = vld [vmem:[%s7802_s26 + $0x8a8] ss:$24 sps:$4 sm:$0xff]  }
  0x95   :  { %2245 = vmatpush1.bf16.msra.mxu1 %v5408_v29  ;;  %2229 = vmatprep.mubr.bf16.mxu1 %v5435_v18  ;;  %v5473_v18 = vld [vmem:[%s7802_s26 + $0x74] ss:$24 sps:$4 sm:$0xff]   ;;  %v5486_v29 = vld [vmem:[%s7802_s26 + $0xd0] ss:$24 sps:$4 sm:$0xff]  }
  0x96   :  { %2058 = vmatpush1.bf16.msra.mxu0 %v5369_v19  ;;  %2246 = vmatprep.subr.bf16.mxu1 %v5416_v31  ;;  %v6680_v19 = vld [vmem:[%s7803_s20 + $0x40] ss:$24 sps:$4 sm:$0xff]  }
  0x97   :  { %2059 = vmatprep.subr.bf16.mxu0 %v5377_v22  ;;  %v6691_v22 = vld [vmem:[%s7803_s20 + $0x74] ss:$24 sps:$4 sm:$0xff]   ;;  %v5492_v31 = vld [vmem:[%s7802_s26 + $0x100] ss:$24 sps:$4 sm:$0xff]  }
  0x99   :  { %2041 = vmatmul.mubr.bf16.gmra.mrb[8].mxu0 %v6492_v25  ;;  %2247 = vmatpush1.bf16.msra.mxu1 %v5414_v33  ;;  %v5500_v33 = vld [vmem:[%s7802_s26 + $0x134] ss:$24 sps:$4 sm:$0xff]  }
  0x9a   :  { %2060 = vmatpush1.bf16.msra.mxu0 %v5375_v23  ;;  %2083 = vmatprep.mubr.bf16.mxu0 %v6503_v28  ;;  %v5479_v23 = vld [vmem:[%s7802_s26 + $0xa4] ss:$24 sps:$4 sm:$0xff]  }
  0x9b   :  { %2061 = vmatprep.subr.bf16.mxu0 %v5383_v26  ;;  %2248 = vmatprep.subr.bf16.mxu1 %v5424_v35  ;;  %v5488_v26 = vld [vmem:[%s7802_s26 + $0xd4] ss:$24 sps:$4 sm:$0xff]   ;;  %v5506_v35 = vld [vmem:[%s7802_s26 + $0x164] ss:$24 sps:$4 sm:$0xff]  }
  0x9c   :  { %2230 = vmatmul.mubr.bf16.gmra.mrb[8].mxu1 %v6492_v25 }
  0x9d   :  { %2249 = vmatpush1.bf16.msra.mxu1 %v5422_v37  ;;  %2272 = vmatprep.mubr.bf16.mxu1 %v6503_v28  ;;  %v5509_v37 = vld [vmem:[%s7802_s26 + $0x194] ss:$24 sps:$4 sm:$0xff]  }
  0x9e   :  { %2062 = vmatpush1.bf16.msra.mxu0 %v5381_v30  ;;  %2250 = vmatprep.subr.bf16.mxu1 %v5431_v39  ;;  %v5494_v30 = vld [vmem:[%s7802_s26 + $0x104] ss:$24 sps:$4 sm:$0xff]  }
  0x9f   :  { %2063 = vmatprep.subr.bf16.mxu0 %v5389_v32  ;;  %v5925_v32 = vld [vmem:[%s7803_s20 + $0x4] ss:$24 sps:$4 sm:$0xff]  }
  0xa0   :  { %v5512_v39 = vld [vmem:[%s7802_s26 + $0x1c4] ss:$24 sps:$4 sm:$0xff]  }
  0xa1   :  { %2251 = vmatpush1.bf16.msra.mxu1 %v5429_v41  ;;  %v5515_v41 = vld [vmem:[%s7802_s26 + $0x1f4] ss:$24 sps:$4 sm:$0xff]  }
  0xa2   :  { %2064 = vmatpush1.bf16.msra.mxu0 %v5387_v34  ;;  %2252 = vmatprep.subr.bf16.mxu1 %v5439_v43  ;;  %v5498_v34 = vld [vmem:[%s7802_s26 + $0x130] ss:$24 sps:$4 sm:$0xff]   ;;  %v5518_v43 = vld [vmem:[%s7802_s26 + $0x224] ss:$24 sps:$4 sm:$0xff]  }
  0xa3   :  { %2065 = vmatprep.subr.bf16.mxu0 %v5395_v36  ;;  %v5504_v36 = vld [vmem:[%s7802_s26 + $0x160] ss:$24 sps:$4 sm:$0xff]  }
  0xa5   :  { %2253 = vmatpush1.bf16.msra.mxu1 %v5437_v45  ;;  %v5521_v45 = vld [vmem:[%s7802_s26 + $0x254] ss:$24 sps:$4 sm:$0xff]  }
  0xa6   :  { %2066 = vmatpush1.bf16.msra.mxu0 %v5393_v38  ;;  %2254 = vmatprep.subr.bf16.mxu1 %v5446_v47  ;;  %v5507_v38 = vld [vmem:[%s7802_s26 + $0x190] ss:$24 sps:$4 sm:$0xff]   ;;  %v5524_v47 = vld [vmem:[%s7802_s26 + $0x284] ss:$24 sps:$4 sm:$0xff]  }
  0xa7   :  { %2067 = vmatprep.subr.bf16.mxu0 %v5401_v40  ;;  %v5510_v40 = vld [vmem:[%s7802_s26 + $0x1c0] ss:$24 sps:$4 sm:$0xff]  }
  0xa9   :  { %2255 = vmatpush1.bf16.msra.mxu1 %v5444_v49  ;;  %v5527_v49 = vld [vmem:[%s7802_s26 + $0x2b4] ss:$24 sps:$4 sm:$0xff]  }
  0xaa   :  { %2068 = vmatpush1.bf16.msra.mxu0 %v5399_v42  ;;  %2256 = vmatprep.subr.bf16.mxu1 %v5455_v51  ;;  %v5513_v42 = vld [vmem:[%s7802_s26 + $0x1f0] ss:$24 sps:$4 sm:$0xff]   ;;  %v5530_v51 = vld [vmem:[%s7802_s26 + $0x2e4] ss:$24 sps:$4 sm:$0xff]  }
  0xab   :  { %2069 = vmatprep.subr.bf16.mxu0 %v5407_v44  ;;  %v5516_v44 = vld [vmem:[%s7802_s26 + $0x220] ss:$24 sps:$4 sm:$0xff]  }
  0xad   :  { %2257 = vmatpush1.bf16.msra.mxu1 %v5453_v53  ;;  %v5533_v53 = vld [vmem:[%s7802_s26 + $0x314] ss:$24 sps:$4 sm:$0xff]  }
  0xae   :  { %2070 = vmatpush1.bf16.msra.mxu0 %v5405_v46  ;;  %2258 = vmatprep.subr.bf16.mxu1 %v5461_v55  ;;  %v5519_v46 = vld [vmem:[%s7802_s26 + $0x250] ss:$24 sps:$4 sm:$0xff]   ;;  %v5536_v55 = vld [vmem:[%s7802_s26 + $0x344] ss:$24 sps:$4 sm:$0xff]  }
  0xaf   :  { %2071 = vmatprep.subr.bf16.mxu0 %v5413_v48  ;;  %v5522_v48 = vld [vmem:[%s7802_s26 + $0x280] ss:$24 sps:$4 sm:$0xff]  }
  0xb1   :  { %2259 = vmatpush1.bf16.msra.mxu1 %v5459_v57  ;;  %v5534_v57 = vld [vmem:[%s7802_s26 + $0x340] ss:$24 sps:$4 sm:$0xff]  }
  0xb2   :  { %2072 = vmatpush1.bf16.msra.mxu0 %v5411_v50  ;;  %2260 = vmatprep.subr.bf16.mxu1 %v5469_v59  ;;  %v5525_v50 = vld [vmem:[%s7802_s26 + $0x2b0] ss:$24 sps:$4 sm:$0xff]   ;;  %v5927_v59 = vld [vmem:[%s7803_s20 + $0x34] ss:$24 sps:$4 sm:$0xff]  }
  0xb3   :  { %2073 = vmatprep.subr.bf16.mxu0 %v5419_v52  ;;  %v5528_v52 = vld [vmem:[%s7802_s26 + $0x2e0] ss:$24 sps:$4 sm:$0xff]  }
  0xb5   :  { %2261 = vmatpush1.bf16.msra.mxu1 %v5467_v62  ;;  %v5537_v62 = vld [vmem:[%s7802_s26 + $0x370] ss:$24 sps:$4 sm:$0xff]  }
  0xb6   :  { %2074 = vmatpush1.bf16.msra.mxu0 %v5417_v54  ;;  %2262 = vmatprep.subr.bf16.mxu1 %v5476_v0  ;;  %v5531_v54 = vld [vmem:[%s7802_s26 + $0x310] ss:$24 sps:$4 sm:$0xff]   ;;  %v5540_v0 = vld [vmem:[%s7802_s26 + $0x3a0] ss:$24 sps:$4 sm:$0xff]  }
  0xb7   :  { %2075 = vmatprep.subr.bf16.mxu0 %v5428_v56  ;;  %v5926_v56 = vld [vmem:[%s7803_s20] ss:$24 sps:$4 sm:$0xff]  }
  0xb9   :  { %2263 = vmatpush1.bf16.msra.mxu1 %v5474_v1  ;;  %v5545_v1 = vld [vmem:[%s7802_s26 + $0x3d4] ss:$24 sps:$4 sm:$0xff]  }
  0xba   :  { %2076 = vmatpush1.bf16.msra.mxu0 %v5426_v58  ;;  %2264 = vmatprep.subr.bf16.mxu1 %v5484_v4  ;;  %v5539_v58 = vld [vmem:[%s7802_s26 + $0x374] ss:$24 sps:$4 sm:$0xff]  }
  0xbb   :  { %2077 = vmatprep.subr.bf16.mxu0 %v5434_v60  ;;  %v5627_v60 = vld [vmem:[%s7782_s4 + $0x40] sm:$0xff]   ;;  %v5630_v4 = vld [vmem:[%s7782_s4 + $0x8] sm:$0xff]  }
  0xbd   :  { %2265 = vmatpush1.bf16.msra.mxu1 %v5482_v5  ;;  %v5631_v5 = vld [vmem:[%s7782_s4 + $0x50] sm:$0xff]  }
  0xbe   :  { %2078 = vmatpush1.bf16.msra.mxu0 %v5432_v61  ;;  %2266 = vmatprep.subr.bf16.mxu1 %v5491_v8  ;;  %v5628_v61 = vld [vmem:[%s7782_s4] sm:$0xff]   ;;  %v5543_v8 = vld [vmem:[%s7802_s26 + $0x3d0] ss:$24 sps:$4 sm:$0xff]  }
  0xbf   :  { %2079 = vmatprep.subr.bf16.mxu0 %v5443_v63  ;;  %v5542_v63 = vld [vmem:[%s7802_s26 + $0x3a4] ss:$24 sps:$4 sm:$0xff]  }
  0xc1   :  { %2267 = vmatpush1.bf16.msra.mxu1 %v5489_v10  ;;  %v5548_v10 = vld [vmem:[%s7802_s26 + $0x404] ss:$24 sps:$4 sm:$0xff]  }
  0xc2   :  { %2080 = vmatpush1.bf16.msra.mxu0 %v5441_v2  ;;  %2268 = vmatprep.subr.bf16.mxu1 %v5497_v14  ;;  %v5928_v2 = vld [vmem:[%s7803_s20 + $0x30] ss:$24 sps:$4 sm:$0xff]   ;;  %v5633_v14 = vld [vmem:[%s7782_s4 + $0x58] sm:$0xff]  }
  0xc3   :  { %2081 = vmatprep.subr.bf16.mxu0 %v5449_v3  ;;  %v5629_v3 = vld [vmem:[%s7782_s4 + $0x48] sm:$0xff]  }
  0xc5   :  { %2269 = vmatpush1.bf16.msra.mxu1 %v5495_v15  ;;  %v5551_v15 = vld [vmem:[%s7802_s26 + $0x434] ss:$24 sps:$4 sm:$0xff]  }
  0xc6   :  { %2082 = vmatpush1.bf16.msra.mxu0 %v5447_v6  ;;  %2270 = vmatprep.subr.bf16.mxu1 %v5503_v17  ;;  %v5929_v6 = vld [vmem:[%s7803_s20 + $0x64] ss:$24 sps:$4 sm:$0xff]  }
  0xc7   :  { %2303 = vmatprep.subr.bf16.mxu0 %v5458_v7  ;;  %v5632_v7 = vld [vmem:[%s7782_s4 + $0x10] sm:$0xff]   ;;  %v5634_v17 = vld [vmem:[%s7782_s4 + $0x18] sm:$0xff]  }
  0xc9   :  { %2084 = vmatmul.mubr.bf16.vlgmr.msra.gmra.mrb[0].mxu0 %v6644_v9  ;;  %2271 = vmatpush1.bf16.msra.mxu1 %v5501_v20  ;;  %v5554_v20 = vld [vmem:[%s7802_s26 + $0x464] ss:$24 sps:$4 sm:$0xff]  }
  0xca   :  { %2304 = vmatpush1.bf16.msra.mxu0 %v5456_v11  ;;  %2093 = vmatprep.mubr.bf16.mxu0 %v6658_v13  ;;  %v5546_v11 = vld [vmem:[%s7802_s26 + $0x400] ss:$24 sps:$4 sm:$0xff]  }
  0xcb   :  { %2305 = vmatprep.subr.bf16.mxu0 %v5464_v12  ;;  %4863 = vmatprep.subr.bf16.mxu1 %v5627_v60  ;;  %v5930_v12 = vld [vmem:[%s7803_s20 + $0x60] ss:$24 sps:$4 sm:$0xff]  }
  0xcc   :  { %2273 = vmatmul.mubr.bf16.vlgmr.msra.gmra.mrb[0].mxu1 %v6644_v9  ;;  %v5934_v60 = vld [vmem:[%s7803_s20 + $0x38] ss:$24 sps:$4 sm:$0xff]  }
  0xcd   :  { %2282 = vmatprep.mubr.bf16.mxu1 %v6658_v13  ;;  %4864 = vmatpush3.bf16.msra.mxu1 %v5628_v61  ;;  %v5588_v61 = vld [vmem:[%s7802_s26 + $0x6a0] ss:$24 sps:$4 sm:$0xff]  }
  0xce   :  { %2306 = vmatpush1.bf16.msra.mxu0 %v5462_v16  ;;  %4865 = vmatprep.subr.bf16.mxu1 %v5629_v3  ;;  %v5931_v16 = vld [vmem:[%s7803_s20 + $0xc] ss:$24 sps:$4 sm:$0xff]  }
  0xcf   :  { %2307 = vmatprep.subr.bf16.mxu0 %v5473_v18  ;;  %v5549_v18 = vld [vmem:[%s7802_s26 + $0x430] ss:$24 sps:$4 sm:$0xff]   ;;  %v5599_v3 = vld [vmem:[%s7802_s26 + $0x734] ss:$24 sps:$4 sm:$0xff]  }
  0xd1   :  { %2094 = vmatmul.mubr.bf16.gmra.mrb[4].mxu0 %v6680_v19  ;;  %4866 = vmatpush3.bf16.msra.mxu1 %v5630_v4  ;;  %v5597_v4 = vld [vmem:[%s7802_s26 + $0x730] ss:$24 sps:$4 sm:$0xff]  }
  0xd2   :  { %2308 = vmatpush1.bf16.msra.mxu0 %v5471_v21  ;;  %2103 = vmatprep.mubr.bf16.mxu0 %v6691_v22  ;;  %v5635_v21 = vld [vmem:[%s7782_s4 + $0x60] sm:$0xff]  }
  0xd3   :  { %2309 = vmatprep.subr.bf16.mxu0 %v5479_v23  ;;  %4867 = vmatprep.subr.bf16.mxu1 %v5631_v5  ;;  %v5636_v23 = vld [vmem:[%s7782_s4 + $0x20] sm:$0xff]   ;;  %v5605_v5 = vld [vmem:[%s7802_s26 + $0x794] ss:$24 sps:$4 sm:$0xff]  }
  0xd4   :  { %2283 = vmatmul.mubr.bf16.gmra.mrb[4].mxu1 %v6680_v19 }
  0xd5   :  { %2292 = vmatprep.mubr.bf16.mxu1 %v6691_v22  ;;  %4868 = vmatpush3.bf16.msra.mxu1 %v5632_v7  ;;  %v5608_v7 = vld [vmem:[%s7802_s26 + $0x7c4] ss:$24 sps:$4 sm:$0xff]  }
  0xd6   :  { %2310 = vmatpush1.bf16.msra.mxu0 %v5477_v24  ;;  %4869 = vmatprep.subr.bf16.mxu1 %v5633_v14  ;;  %v5552_v24 = vld [vmem:[%s7802_s26 + $0x460] ss:$24 sps:$4 sm:$0xff]  }
  0xd7   :  { %2311 = vmatprep.subr.bf16.mxu0 %v5488_v26  ;;  %v5557_v26 = vld [vmem:[%s7802_s26 + $0x494] ss:$24 sps:$4 sm:$0xff]   ;;  %v5612_v14 = vld [vmem:[%s7802_s26 + $0x820] ss:$24 sps:$4 sm:$0xff]  }
  0xd9   :  { %2104 = vmatmul.mubr.bf16.gmra.mrb[8].mxu0 %v6708_v27  ;;  %4870 = vmatpush3.bf16.msra.mxu1 %v5634_v17  ;;  %v5620_v17 = vld [vmem:[%s7802_s26 + $0x884] ss:$24 sps:$4 sm:$0xff]  }
  0xda   :  { %2312 = vmatpush1.bf16.msra.mxu0 %v5486_v29  ;;  %2335 = vmatprep.mubr.bf16.mxu0 %v5925_v32  ;;  %v5637_v29 = vld [vmem:[%s7782_s4 + $0x68] sm:$0xff]   ;;  %v5560_v32 = vld [vmem:[%s7802_s26 + $0x4c4] ss:$24 sps:$4 sm:$0xff]  }
  0xdb   :  { %2313 = vmatprep.subr.bf16.mxu0 %v5494_v30  ;;  %4871 = vmatprep.subr.bf16.mxu1 %v5635_v21  ;;  %v5638_v30 = vld [vmem:[%s7782_s4 + $0x28] sm:$0xff]  }
  0xdc   :  { %2293 = vmatmul.mubr.bf16.gmra.mrb[8].mxu1 %v6708_v27  ;;  %v5621_v21 = vld [vmem:[%s7802_s26 + $0x8b0] ss:$24 sps:$4 sm:$0xff]  }
  0xdd   :  { %4872 = vmatpush3.bf16.msra.mxu1 %v5636_v23  ;;  %v5626_v23 = vld [vmem:[%s7802_s26 + $0x8e4] ss:$24 sps:$4 sm:$0xff]  }
  0xde   :  { %2314 = vmatpush1.bf16.msra.mxu0 %v5492_v31  ;;  %4873 = vmatprep.subr.bf16.mxu1 %v5637_v29  ;;  %v5555_v31 = vld [vmem:[%s7802_s26 + $0x490] ss:$24 sps:$4 sm:$0xff]  }
  0xdf   :  { %2315 = vmatprep.subr.bf16.mxu0 %v5500_v33  ;;  %v5639_v33 = vld [vmem:[%s7782_s4 + $0x70] sm:$0xff]  }
  0xe1   :  { %4874 = vmatpush3.bf16.msra.mxu1 %v5638_v30 }
  0xe2   :  { %2316 = vmatpush1.bf16.msra.mxu0 %v5498_v34  ;;  %v5640_v34 = vld [vmem:[%s7782_s4 + $0x30] sm:$0xff]   ;;  %4875 = vmatprep.subr.bf16.mxu1 %v5639_v33 }
  0xe3   :  { %2317 = vmatprep.subr.bf16.mxu0 %v5506_v35  ;;  %v5558_v35 = vld [vmem:[%s7802_s26 + $0x4c0] ss:$24 sps:$4 sm:$0xff]  }
  0xe5   :  { %4876 = vmatpush3.bf16.msra.mxu1 %v5640_v34 }
  0xe6   :  { %2318 = vmatpush1.bf16.msra.mxu0 %v5504_v36  ;;  %v5563_v36 = vld [vmem:[%s7802_s26 + $0x4f4] ss:$24 sps:$4 sm:$0xff]  }
  0xe7   :  { %2319 = vmatprep.subr.bf16.mxu0 %v5509_v37  ;;  %v5641_v37 = vld [vmem:[%s7782_s4 + $0x78] sm:$0xff]  }
  0xe8   :  { %4877 = vmatprep.subr.bf16.mxu1 %v5641_v37 }
  0xea   :  { %2320 = vmatpush1.bf16.msra.mxu0 %v5507_v38  ;;  %v5642_v38 = vld [vmem:[%s7782_s4 + $0x38] sm:$0xff]  }
  0xeb   :  { %2321 = vmatprep.subr.bf16.mxu0 %v5512_v39  ;;  %v5561_v39 = vld [vmem:[%s7802_s26 + $0x4f0] ss:$24 sps:$4 sm:$0xff]   ;;  %4878 = vmatpush3.bf16.msra.mxu1 %v5642_v38 }
  0xee   :  { %2322 = vmatpush1.bf16.msra.mxu0 %v5510_v40  ;;  %v5643_v40 = vld [vmem:[%s7782_s4 + $0xc0] sm:$0xff]  }
  0xef   :  { %2323 = vmatprep.subr.bf16.mxu0 %v5515_v41  ;;  %v5566_v41 = vld [vmem:[%s7802_s26 + $0x524] ss:$24 sps:$4 sm:$0xff]   ;;  %4897 = vmatprep.subr.bf16.mxu1 %v5643_v40 }
  0xf2   :  { %2324 = vmatpush1.bf16.msra.mxu0 %v5513_v42  ;;  %v5564_v42 = vld [vmem:[%s7802_s26 + $0x520] ss:$24 sps:$4 sm:$0xff]  }
  0xf3   :  { %2325 = vmatprep.subr.bf16.mxu0 %v5518_v43  ;;  %v5569_v43 = vld [vmem:[%s7802_s26 + $0x554] ss:$24 sps:$4 sm:$0xff]  }
  0xf6   :  { %2326 = vmatpush1.bf16.msra.mxu0 %v5516_v44  ;;  %v5567_v44 = vld [vmem:[%s7802_s26 + $0x550] ss:$24 sps:$4 sm:$0xff]  }
  0xf7   :  { %2327 = vmatprep.subr.bf16.mxu0 %v5521_v45  ;;  %v5572_v45 = vld [vmem:[%s7802_s26 + $0x584] ss:$24 sps:$4 sm:$0xff]  }
  0xfa   :  { %2328 = vmatpush1.bf16.msra.mxu0 %v5519_v46  ;;  %v5570_v46 = vld [vmem:[%s7802_s26 + $0x580] ss:$24 sps:$4 sm:$0xff]  }
  0xfb   :  { %2329 = vmatprep.subr.bf16.mxu0 %v5524_v47  ;;  %v5575_v47 = vld [vmem:[%s7802_s26 + $0x5b4] ss:$24 sps:$4 sm:$0xff]  }
  0xfe   :  { %2330 = vmatpush1.bf16.msra.mxu0 %v5522_v48  ;;  %v5573_v48 = vld [vmem:[%s7802_s26 + $0x5b0] ss:$24 sps:$4 sm:$0xff]  }
  0xff   :  { %2331 = vmatprep.subr.bf16.mxu0 %v5527_v49  ;;  %v5578_v49 = vld [vmem:[%s7802_s26 + $0x5e4] ss:$24 sps:$4 sm:$0xff]  }
 0x102   :  { %2332 = vmatpush1.bf16.msra.mxu0 %v5525_v50  ;;  %v5576_v50 = vld [vmem:[%s7802_s26 + $0x5e0] ss:$24 sps:$4 sm:$0xff]  }
 0x103   :  { %2333 = vmatprep.subr.bf16.mxu0 %v5530_v51  ;;  %v5581_v51 = vld [vmem:[%s7802_s26 + $0x614] ss:$24 sps:$4 sm:$0xff]  }
 0x106   :  { %2334 = vmatpush1.bf16.msra.mxu0 %v5528_v52  ;;  %v5579_v52 = vld [vmem:[%s7802_s26 + $0x610] ss:$24 sps:$4 sm:$0xff]  }
 0x107   :  { %2366 = vmatprep.subr.bf16.mxu0 %v5533_v53  ;;  %v5584_v53 = vld [vmem:[%s7802_s26 + $0x644] ss:$24 sps:$4 sm:$0xff]  }
 0x109   :  { %2336 = vmatmul.mubr.bf16.vlgmr.msra.gmra.mrb[12].mxu0 %v5926_v56  ;;  %v5933_v56 = vld [vmem:[%s7803_s20 + $0x3c] ss:$24 sps:$4 sm:$0xff]  }
 0x10a   :  { %2367 = vmatpush1.bf16.msra.mxu0 %v5531_v54  ;;  %2345 = vmatprep.mubr.bf16.mxu0 %v5927_v59  ;;  %v5932_v54 = vld [vmem:[%s7803_s20 + $0x8] ss:$24 sps:$4 sm:$0xff]   ;;  %v5590_v59 = vld [vmem:[%s7802_s26 + $0x6a4] ss:$24 sps:$4 sm:$0xff]  }
 0x10b   :  { %2368 = vmatprep.subr.bf16.mxu0 %v5536_v55  ;;  %v5582_v55 = vld [vmem:[%s7802_s26 + $0x640] ss:$24 sps:$4 sm:$0xff]  }
 0x10e   :  { %2369 = vmatpush1.bf16.msra.mxu0 %v5534_v57  ;;  %v5587_v57 = vld [vmem:[%s7802_s26 + $0x674] ss:$24 sps:$4 sm:$0xff]  }
 0x10f   :  { %2370 = vmatprep.subr.bf16.mxu0 %v5539_v58  ;;  %v5585_v58 = vld [vmem:[%s7802_s26 + $0x670] ss:$24 sps:$4 sm:$0xff]  }
 0x111   :  { %2346 = vmatmul.mubr.bf16.gmra.mrb[16].mxu0 %v5928_v2  ;;  %v5594_v2 = vld [vmem:[%s7802_s26 + $0x700] ss:$24 sps:$4 sm:$0xff]  }
 0x112   :  { %2371 = vmatpush1.bf16.msra.mxu0 %v5537_v62  ;;  %2355 = vmatprep.mubr.bf16.mxu0 %v5929_v6  ;;  %v5935_v62 = vld [vmem:[%s7803_s20 + $0x6c] ss:$24 sps:$4 sm:$0xff]   ;;  %v5603_v6 = vld [vmem:[%s7802_s26 + $0x790] ss:$24 sps:$4 sm:$0xff]  }
 0x113   :  { %2372 = vmatprep.subr.bf16.mxu0 %v5542_v63  ;;  %v5593_v63 = vld [vmem:[%s7802_s26 + $0x6d4] ss:$24 sps:$4 sm:$0xff]  }
 0x116   :  { %2373 = vmatpush1.bf16.msra.mxu0 %v5540_v0  ;;  %v5591_v0 = vld [vmem:[%s7802_s26 + $0x6d0] ss:$24 sps:$4 sm:$0xff]  }
 0x117   :  { %2374 = vmatprep.subr.bf16.mxu0 %v5545_v1  ;;  %v5596_v1 = vld [vmem:[%s7802_s26 + $0x704] ss:$24 sps:$4 sm:$0xff]  }
 0x119   :  { %2356 = vmatmul.mubr.bf16.gmra.mrb[20].mxu0 %v5930_v12  ;;  %v5614_v12 = vld [vmem:[%s7802_s26 + $0x824] ss:$24 sps:$4 sm:$0xff]  }
 0x11a   :  { %2375 = vmatpush1.bf16.msra.mxu0 %v5543_v8  ;;  %2398 = vmatprep.mubr.bf16.mxu0 %v5931_v16  ;;  %v5606_v8 = vld [vmem:[%s7802_s26 + $0x7c0] ss:$24 sps:$4 sm:$0xff]   ;;  %v5615_v16 = vld [vmem:[%s7802_s26 + $0x850] ss:$24 sps:$4 sm:$0xff]  }
 0x11b   :  { %2376 = vmatprep.subr.bf16.mxu0 %v5548_v10  ;;  %v5611_v10 = vld [vmem:[%s7802_s26 + $0x7f4] ss:$24 sps:$4 sm:$0xff]  }
 0x11e   :  { %2377 = vmatpush1.bf16.msra.mxu0 %v5546_v11  ;;  %v5609_v11 = vld [vmem:[%s7802_s26 + $0x7f0] ss:$24 sps:$4 sm:$0xff]  }
 0x11f   :  { %2378 = vmatprep.subr.bf16.mxu0 %v5551_v15  ;;  %v5617_v15 = vld [vmem:[%s7802_s26 + $0x854] ss:$24 sps:$4 sm:$0xff]  }
 0x122   :  { %2379 = vmatpush1.bf16.msra.mxu0 %v5549_v18  ;;  %v5618_v18 = vld [vmem:[%s7802_s26 + $0x880] ss:$24 sps:$4 sm:$0xff]  }
 0x123   :  { %2380 = vmatprep.subr.bf16.mxu0 %v5554_v20  ;;  %v5623_v20 = vld [vmem:[%s7802_s26 + $0x8b4] ss:$24 sps:$4 sm:$0xff]  }
 0x126   :  { %2381 = vmatpush1.bf16.msra.mxu0 %v5552_v24  ;;  %v5624_v24 = vld [vmem:[%s7802_s26 + $0x8e0] ss:$24 sps:$4 sm:$0xff]  }
 0x127   :  { %2382 = vmatprep.subr.bf16.mxu0 %v5557_v26  ;;  %v365_v26 = vlaneseq }
 0x129   :  { %v7065_v29 = vshrl.u32 %v365_v26, 7 }
 0x12a   :  { %2383 = vmatpush1.bf16.msra.mxu0 %v5555_v31  ;;  %v7072_v31 = vld [vmem:[%s7783_s3] sm:$0x3f] }
 0x12b   :  { %2384 = vmatprep.subr.bf16.mxu0 %v5560_v32  ;;  %v367_v30 = vsub.s32 0, %v7065_v29  ;;  %v371_v32 = vsub.s32 1, %v7065_v29 }
 0x12e   :  { %2385 = vmatpush1.bf16.msra.mxu0 %v5558_v35 }
 0x12f   :  { %2386 = vmatprep.subr.bf16.mxu0 %v5563_v36 }
 0x132   :  { %2387 = vmatpush1.bf16.msra.mxu0 %v5561_v39  ;;  %v379_v39 = vsub.s32 3, %v7065_v29 }
 0x133   :  { %2388 = vmatprep.subr.bf16.mxu0 %v5566_v41 }
 0x136   :  { %2389 = vmatpush1.bf16.msra.mxu0 %v5564_v42 }
 0x137   :  { %2390 = vmatprep.subr.bf16.mxu0 %v5569_v43 }
 0x13a   :  { %2391 = vmatpush1.bf16.msra.mxu0 %v5567_v44  ;;  %v7092_v44 = vrot.slane %v7072_v31, %v379_v39 }
 0x13b   :  { %2392 = vmatprep.subr.bf16.mxu0 %v5572_v45 }
 0x13e   :  { %2393 = vmatpush1.bf16.msra.mxu0 %v5570_v46 }
 0x13f   :  { %2394 = vmatprep.subr.bf16.mxu0 %v5575_v47 }
 0x142   :  { %2395 = vmatpush1.bf16.msra.mxu0 %v5573_v48 }
 0x143   :  { %2396 = vmatprep.subr.bf16.mxu0 %v5578_v49 }
 0x146   :  { %2397 = vmatpush1.bf16.msra.mxu0 %v5576_v50 }
 0x147   :  { %2429 = vmatprep.subr.bf16.mxu0 %v5581_v51 }
 0x149   :  { %2399 = vmatmul.mubr.bf16.vlgmr.msra.gmra.mrb[12].mxu0 %v5932_v54 }
 0x14a   :  { %2430 = vmatpush1.bf16.msra.mxu0 %v5579_v52  ;;  %2408 = vmatprep.mubr.bf16.mxu0 %v5933_v56 }
 0x14b   :  { %2431 = vmatprep.subr.bf16.mxu0 %v5584_v53 }
 0x14e   :  { %2432 = vmatpush1.bf16.msra.mxu0 %v5582_v55 }
 0x14f   :  { %2433 = vmatprep.subr.bf16.mxu0 %v5587_v57 }
 0x151   :  { %2409 = vmatmul.mubr.bf16.gmra.mrb[16].mxu0 %v5934_v60 }
 0x152   :  { %2434 = vmatpush1.bf16.msra.mxu0 %v5585_v58  ;;  %2418 = vmatprep.mubr.bf16.mxu0 %v5935_v62 }
 0x153   :  { %2435 = vmatprep.subr.bf16.mxu0 %v5590_v59 }
 0x156   :  { %2436 = vmatpush1.bf16.msra.mxu0 %v5588_v61 }
 0x157   :  { %2437 = vmatprep.subr.bf16.mxu0 %v5593_v63 }
 0x159   :  { %2419 = vmatmul.mubr.bf16.gmra.mrb[20].mxu0 %v6492_v25  ;;  %v5602_v25 = vld [vmem:[%s7802_s26 + $0x764] ss:$24 sps:$4 sm:$0xff]  }
 0x15a   :  { %2438 = vmatpush1.bf16.msra.mxu0 %v5591_v0  ;;  %2461 = vmatprep.mubr.bf16.mxu0 %v6503_v28  ;;  %v5600_v28 = vld [vmem:[%s7802_s26 + $0x760] ss:$24 sps:$4 sm:$0xff]  }
 0x15b   :  { %2439 = vmatprep.subr.bf16.mxu0 %v5596_v1 }
 0x15e   :  { %2440 = vmatpush1.bf16.msra.mxu0 %v5594_v2 }
 0x15f   :  { %2441 = vmatprep.subr.bf16.mxu0 %v5599_v3  ;;  %v5644_v3 = vld [vmem:[%s7782_s4 + $0x80] sm:$0xff]  }
 0x162   :  { %2442 = vmatpush1.bf16.msra.mxu0 %v5597_v4 }
 0x163   :  { %2443 = vmatprep.subr.bf16.mxu0 %v5602_v25 }
 0x166   :  { %2444 = vmatpush1.bf16.msra.mxu0 %v5600_v28  ;;  %v5645_v28 = vld [vmem:[%s7782_s4 + $0xc8] sm:$0xff]  }
 0x167   :  { %2445 = vmatprep.subr.bf16.mxu0 %v5605_v5 }
 0x16a   :  { %2446 = vmatpush1.bf16.msra.mxu0 %v5603_v6 }
 0x16b   :  { %2447 = vmatprep.subr.bf16.mxu0 %v5608_v7 }
 0x16e   :  { %2448 = vmatpush1.bf16.msra.mxu0 %v5606_v8 }
 0x16f   :  { %2449 = vmatprep.subr.bf16.mxu0 %v5611_v10 }
 0x172   :  { %2450 = vmatpush1.bf16.msra.mxu0 %v5609_v11 }
 0x173   :  { %2451 = vmatprep.subr.bf16.mxu0 %v5614_v12 }
 0x176   :  { %2452 = vmatpush1.bf16.msra.mxu0 %v5612_v14  ;;  %v5646_v14 = vld [vmem:[%s7782_s4 + $0x88] sm:$0xff]  }
 0x177   :  { %2453 = vmatprep.subr.bf16.mxu0 %v5617_v15 }
 0x17a   :  { %2454 = vmatpush1.bf16.msra.mxu0 %v5615_v16 }
 0x17b   :  { %2455 = vmatprep.subr.bf16.mxu0 %v5620_v17 }
 0x17e   :  { %2456 = vmatpush1.bf16.msra.mxu0 %v5618_v18  ;;  %v5647_v18 = vld [vmem:[%s7782_s4 + $0xd0] sm:$0xff]  }
 0x17f   :  { %2457 = vmatprep.subr.bf16.mxu0 %v5623_v20 }
 0x182   :  { %2458 = vmatpush1.bf16.msra.mxu0 %v5621_v21 }
 0x183   :  { %2459 = vmatprep.subr.bf16.mxu0 %v5626_v23 }
 0x186   :  { %2460 = vmatpush1.bf16.msra.mxu0 %v5624_v24 }
 0x189   :  { %2462 = vmatmul.mubr.bf16.vlgmr.msra.gmra.mrb[12].mxu0 %v6644_v9  ;;  %v368_v9 = vrot.slane %v7072_v31, %v367_v30 }
 0x18a   :  { %2471 = vmatprep.mubr.bf16.mxu0 %v6658_v13  ;;  %v372_v13 = vrot.slane %v7072_v31, %v371_v32 }
 0x191   :  { %2472 = vmatmul.mubr.bf16.gmra.mrb[16].mxu0 %v6680_v19 }
 0x192   :  { %2481 = vmatprep.mubr.bf16.mxu0 %v6691_v22 }
 0x199   :  { %2482 = vmatmul.mubr.bf16.gmra.mrb[20].mxu0 %v6708_v27  ;;  %v375_v27 = vsub.s32 2, %v7065_v29 }
 0x19b   :  { %v7087_v41 = vrot.slane %v7072_v31, %v375_v27 }
 0x19c   :  { %v2085_v19 = vpop.f32.mrb[0].mxu0 }
 0x19d   :  { %v5045_v22 = vadd.f32 %v2085_v19, %v368_v9  ;;  %v2087_v33 = vpop.f32.mrb[1].mxu0 }
 0x19e   :  { %v5046_v34 = vadd.f32 %v2087_v33, %v372_v13  ;;  %v2089_v35 = vpop.f32.mrb[2].mxu0 }
 0x19f   :  { %5803 = vtanh.f32 %v5045_v22  ;;  %v5047_v36 = vadd.f32 %v2089_v35, %v368_v9  ;;  %v2091_v37 = vpop.f32.mrb[3].mxu0  ;;  %v2274_v49 = vpop.f32.mrb[0].mxu1  ;;  %v5648_v22 = vld [vmem:[%s7782_s4 + $0x90] sm:$0xff]  }
 0x1a0   :  { %5805 = vtanh.f32 %v5046_v34  ;;  %v5048_v38 = vadd.f32 %v2091_v37, %v372_v13  ;;  %v5057_v51 = vadd.f32 %v2274_v49, %v7087_v41  ;;  %v2276_v52 = vpop.f32.mrb[1].mxu1  ;;  %v5649_v34 = vld [vmem:[%s7782_s4 + $0xd8] sm:$0xff]  }
 0x1a1   :  { %5807 = vtanh.f32 %v5047_v36  ;;  %v5058_v54 = vadd.f32 %v2276_v52, %v7092_v44  ;;  %v2278_v55 = vpop.f32.mrb[2].mxu1 }
 0x1a2   :  { %5809 = vtanh.f32 %v5048_v38  ;;  %v5059_v57 = vadd.f32 %v2278_v55, %v7087_v41  ;;  %v2280_v58 = vpop.f32.mrb[3].mxu1 }
 0x1a3   :  { %v5060_v60 = vadd.f32 %v2280_v58, %v7092_v44 }
 0x1a4   :  { %v2095_v40 = vpop.f32.mrb[4].mxu0 }
 0x1a5   :  { %v5049_v42 = vadd.f32 %v2095_v40, %v368_v9  ;;  %v2097_v43 = vpop.f32.mrb[5].mxu0 }
 0x1a6   :  { %v5050_v45 = vadd.f32 %v2097_v43, %v372_v13  ;;  %v2099_v46 = vpop.f32.mrb[6].mxu0 }
 0x1a7   :  { %5811 = vtanh.f32 %v5049_v42  ;;  %v5051_v47 = vadd.f32 %v2099_v46, %v368_v9  ;;  %v2101_v48 = vpop.f32.mrb[7].mxu0  ;;  %v2284_v7 = vpop.f32.mrb[4].mxu1 }
 0x1a8   :  { %5813 = vtanh.f32 %v5050_v45  ;;  %v5052_v50 = vadd.f32 %v2101_v48, %v372_v13  ;;  %v5061_v10 = vadd.f32 %v2284_v7, %v7087_v41  ;;  %v2286_v11 = vpop.f32.mrb[5].mxu1  ;;  %v5650_v45 = vld [vmem:[%s7782_s4 + $0x98] sm:$0xff]  }
 0x1a9   :  { %v5804_v53 = vpop.eup %5803  ;;  %5815 = vtanh.f32 %v5051_v47  ;;  %v5062_v15 = vadd.f32 %v2286_v11, %v7092_v44  ;;  %v2288_v16 = vpop.f32.mrb[6].mxu1  ;;  %v5660_v11 = vld [vmem:[%s7782_s4 + $0x100] sm:$0xff]  }
 0x1aa   :  { %v5806_v56 = vpop.eup %5805  ;;  %5817 = vtanh.f32 %v5052_v50  ;;  %v5063_v20 = vadd.f32 %v2288_v16, %v7087_v41  ;;  %v2290_v21 = vpop.f32.mrb[7].mxu1  ;;  %v5651_v50 = vld [vmem:[%s7782_s4 + $0xe0] sm:$0xff]   ;;  %v5664_v16 = vld [vmem:[%s7782_s4 + $0x110] sm:$0xff]  }
 0x1ab   :  { %v5808_v59 = vpop.eup %5807  ;;  %5819 = vtanh.f32 %v5057_v51  ;;  %v5064_v24 = vadd.f32 %v2290_v21, %v7092_v44  ;;  %v5668_v21 = vld [vmem:[%s7782_s4 + $0x120] sm:$0xff]  }
 0x1ac   :  { %v5810_v61 = vpop.eup %5809  ;;  %v2105_v62 = vpop.f32.mrb[8].mxu0  ;;  %v2528_v63 = vpack.c.bf16 %v5808_v59, %v5804_v53  ;;  %5821 = vtanh.f32 %v5058_v54  ;;  %v5652_v59 = vld [vmem:[%s7782_s4 + $0xa0] sm:$0xff]  }
 0x1ad   :  { %v5053_v0 = vadd.f32 %v2105_v62, %v368_v9  ;;  %v2107_v1 = vpop.f32.mrb[9].mxu0  ;;  %v2529_v2 = vpack.c.bf16 %v5810_v61, %v5806_v56  ;;  %5823 = vtanh.f32 %v5059_v57 }
 0x1ae   :  { %v5054_v4 = vadd.f32 %v2107_v1, %v372_v13  ;;  %v2109_v25 = vpop.f32.mrb[10].mxu0  ;;  %5825 = vtanh.f32 %v5060_v60  ;;  %v5655_v1 = vld [vmem:[%s7782_s4 + $0xf0] sm:$0xff]  }
 0x1af   :  { %5827 = vtanh.f32 %v5053_v0  ;;  %v5055_v5 = vadd.f32 %v2109_v25, %v368_v9  ;;  %v2111_v6 = vpop.f32.mrb[11].mxu0  ;;  %2969 = vmatprep.mubr.bf16.mxu1 %v2529_v2  ;;  %v2294_v36 = vpop.f32.mrb[8].mxu1 }
 0x1b0   :  { %5829 = vtanh.f32 %v5054_v4  ;;  %v5056_v8 = vadd.f32 %v2111_v6, %v372_v13  ;;  %2970 = vmatmul.mubr.bf16.vlgmr.msra.gmra.mrb[12].mxu1 %v2528_v63  ;;  %v5065_v38 = vadd.f32 %v2294_v36, %v7087_v41  ;;  %v2296_v40 = vpop.f32.mrb[9].mxu1  ;;  %v5654_v63 = vld [vmem:[%s7782_s4 + $0xa8] sm:$0xff]   ;;  %v5656_v4 = vld [vmem:[%s7782_s4 + $0xb0] sm:$0xff]  }
 0x1b1   :  { %v5812_v12 = vpop.eup %5811  ;;  %5831 = vtanh.f32 %v5055_v5  ;;  %4898 = vmatpush3.bf16.msra.mxu1 %v5644_v3  ;;  %v5066_v46 = vadd.f32 %v2296_v40, %v7092_v44  ;;  %v2298_v47 = vpop.f32.mrb[10].mxu1  ;;  %v7228_v36 = vld [vmem:[%s7784_s11 + $0x20] ss:$16 sps:$4 sm:$0xff]   ;;  %v7246_v40 = vld [vmem:[%s7784_s11 + $0x64] ss:$16 sps:$4 sm:$0xff]  }
 0x1b2   :  { %v5814_v17 = vpop.eup %5813  ;;  %5833 = vtanh.f32 %v5056_v8  ;;  %4899 = vmatprep.subr.bf16.mxu1 %v5645_v28  ;;  %v5067_v51 = vadd.f32 %v2298_v47, %v7087_v41  ;;  %v2300_v52 = vpop.f32.mrb[11].mxu1  ;;  %v5653_v41 = vld [vmem:[%s7782_s4 + $0xe8] sm:$0xff]   ;;  %v5657_v28 = vld [vmem:[%s7782_s4 + $0xf8] sm:$0xff]   ;;  %v7275_v47 = vld [vmem:[%s7784_s11 + $0xa0] ss:$16 sps:$4 sm:$0xff]  }
 0x1b3   :  { %v5816_v23 = vpop.eup %5815  ;;  %5835 = vtanh.f32 %v5061_v10  ;;  %v5068_v54 = vadd.f32 %v2300_v52, %v7092_v44  ;;  %v5658_v8 = vld [vmem:[%s7782_s4 + $0xb8] sm:$0xff]   ;;  %v5659_v10 = vld [vmem:[%s7782_s4 + $0x140] sm:$0xff]  }
 0x1b4   :  { %v5818_v26 = vpop.eup %5817  ;;  %v2534_v9 = vpack.c.bf16 %v5816_v23, %v5812_v12  ;;  %5837 = vtanh.f32 %v5062_v15  ;;  %v5661_v12 = vld [vmem:[%s7782_s4 + $0x148] sm:$0xff]   ;;  %v5663_v15 = vld [vmem:[%s7782_s4 + $0x150] sm:$0xff]  }
 0x1b5   :  { %v7114_v13 = vpop.eup %5819  ;;  %4900 = vmatpush3.bf16.msra.mxu1 %v5646_v14  ;;  %v2535_v19 = vpack.c.bf16 %v5818_v26, %v5814_v17  ;;  %5839 = vtanh.f32 %v5063_v20  ;;  %v5662_v14 = vld [vmem:[%s7782_s4 + $0x108] sm:$0xff]   ;;  %v5665_v17 = vld [vmem:[%s7782_s4 + $0x158] sm:$0xff]   ;;  %v5667_v20 = vld [vmem:[%s7782_s4 + $0x160] sm:$0xff]  }
 0x1b6   :  { %v5822_v33 = vpop.eup %5821  ;;  %4901 = vmatprep.subr.bf16.mxu1 %v5647_v18  ;;  %5841 = vtanh.f32 %v5064_v24  ;;  %v5666_v18 = vld [vmem:[%s7782_s4 + $0x118] sm:$0xff]   ;;  %v5669_v23 = vld [vmem:[%s7782_s4 + $0x168] sm:$0xff]   ;;  %v5671_v26 = vld [vmem:[%s7782_s4 + $0x170] sm:$0xff]  }
 0x1b7   :  { %v7122_v35 = vpop.eup %5823  ;;  %2977 = vmatprep.mubr.bf16.mxu1 %v2535_v19  ;;  %5843 = vtanh.f32 %v5065_v38  ;;  %v5670_v24 = vld [vmem:[%s7782_s4 + $0x128] sm:$0xff]   ;;  %v5674_v19 = vld [vmem:[%s7782_s4 + $0x138] sm:$0xff]   ;;  %v7240_v38 = vld [vmem:[%s7784_s11 + $0x40] ss:$16 sps:$4 sm:$0xff]  }
 0x1b8   :  { %v5826_v37 = vpop.eup %5825  ;;  %2978 = vmatmul.mubr.bf16.gmra.mrb[16].mxu1 %v2534_v9  ;;  %v2530_v42 = vpack.c.bf16 %v7122_v35, %v7114_v13  ;;  %5845 = vtanh.f32 %v5066_v46  ;;  %v5672_v9 = vld [vmem:[%s7782_s4 + $0x130] sm:$0xff]   ;;  %v5673_v13 = vld [vmem:[%s7782_s4 + $0x178] sm:$0xff]   ;;  %v5681_v35 = vld [vmem:[%s7785_s8 + $0x40] sm:$0xff]  }
 0x1b9   :  { %v5828_v43 = vpop.eup %5827  ;;  %4902 = vmatpush3.bf16.msra.mxu1 %v5648_v22  ;;  %v2531_v48 = vpack.c.bf16 %v5826_v37, %v5822_v33  ;;  %5847 = vtanh.f32 %v5067_v51  ;;  %v7208_v22 = vld [vmem:[%s7784_s11] ss:$16 sps:$4 sm:$0xff]   ;;  %v7213_v33 = vld [vmem:[%s7784_s11 + $0x4] ss:$16 sps:$4 sm:$0xff]  }
 0x1ba   :  { %v5830_v49 = vpop.eup %5829  ;;  %4903 = vmatprep.subr.bf16.mxu1 %v5649_v34  ;;  %5849 = vtanh.f32 %v5068_v54  ;;  %v7218_v34 = vld [vmem:[%s7784_s11 + $0x24] ss:$16 sps:$4 sm:$0xff]   ;;  %3835 = vmatprep.subr.bf16.mxu0 %v7213_v33 }
 0x1bb   :  { %v5832_v53 = vpop.eup %5831  ;;  %3836 = vmatpush1.bf16.msra.mxu0 %v7208_v22  ;;  %v7234_v37 = vld [vmem:[%s7784_s11 + $0x44] ss:$16 sps:$4 sm:$0xff]  }
 0x1bc   :  { %v5834_v55 = vpop.eup %5833  ;;  %v2540_v56 = vpack.c.bf16 %v5832_v53, %v5828_v43  ;;  %3837 = vmatprep.subr.bf16.mxu0 %v7218_v34  ;;  %v7258_v43 = vld [vmem:[%s7784_s11 + $0x84] ss:$16 sps:$4 sm:$0xff]  }
 0x1bd   :  { %v5836_v57 = vpop.eup %5835  ;;  %4904 = vmatpush3.bf16.msra.mxu1 %v5650_v45  ;;  %v2541_v58 = vpack.c.bf16 %v5834_v55, %v5830_v49  ;;  %v7263_v45 = vld [vmem:[%s7784_s11 + $0x80] ss:$16 sps:$4 sm:$0xff]   ;;  %v7268_v46 = vld [vmem:[%s7784_s11 + $0xa4] ss:$16 sps:$4 sm:$0xff]   ;;  %v387_v49 = vsub.s32 5, %v7065_v29 }
 0x1be   :  { %v5838_v60 = vpop.eup %5837  ;;  %4905 = vmatprep.subr.bf16.mxu1 %v5651_v50 }
 0x1bf   :  { %v5840_v61 = vpop.eup %5839  ;;  %2985 = vmatprep.mubr.bf16.mxu1 %v2541_v58  ;;  %3838 = vmatpush1.bf16.msra.mxu0 %v7228_v36  ;;  %v388_v51 = vrot.slane %v7072_v31, %v387_v49 }
 0x1c0   :  { %v5842_v44 = vpop.eup %5841  ;;  %2986 = vmatmul.mubr.bf16.gmra.mrb[20].mxu1 %v2540_v56  ;;  %v2536_v62 = vpack.c.bf16 %v5840_v61, %v5836_v57  ;;  %3839 = vmatprep.subr.bf16.mxu0 %v7234_v37 }
 0x1c1   :  { %4906 = vmatpush3.bf16.msra.mxu1 %v5652_v59  ;;  %3026 = vmatprep.mubr.bf16.mxu1 %v2531_v48  ;;  %v2537_v0 = vpack.c.bf16 %v5842_v44, %v5838_v60  ;;  %v5844_v2 = vpop.eup %5843  ;;  %v383_v48 = vsub.s32 4, %v7065_v29 }
 0x1c2   :  { %4907 = vmatprep.subr.bf16.mxu1 %v5653_v41  ;;  %v5846_v3 = vpop.eup %5845 }
 0x1c3   :  { %v5848_v25 = vpop.eup %5847  ;;  %3840 = vmatpush1.bf16.msra.mxu0 %v7240_v38  ;;  %v384_v50 = vrot.slane %v7072_v31, %v383_v48  ;;  %v5697_v48 = vld [vmem:[%s7785_s8 + $0x18] sm:$0xff]  }
 0x1c4   :  { %v5850_v5 = vpop.eup %5849  ;;  %v2542_v6 = vpack.c.bf16 %v5848_v25, %v5844_v2  ;;  %3841 = vmatprep.subr.bf16.mxu0 %v7246_v40 }
 0x1c5   :  { %4908 = vmatpush3.bf16.msra.mxu1 %v5654_v63  ;;  %v2543_v7 = vpack.c.bf16 %v5850_v5, %v5846_v3 }
 0x1c6   :  { %4909 = vmatprep.subr.bf16.mxu1 %v5655_v1 }
 0x1c9   :  { %4910 = vmatpush3.bf16.msra.mxu1 %v5656_v4 }
 0x1ca   :  { %4911 = vmatprep.subr.bf16.mxu1 %v5657_v28 }
 0x1cd   :  { %4912 = vmatpush3.bf16.msra.mxu1 %v5658_v8  ;;  %v5682_v8 = vld [vmem:[%s7785_s8] sm:$0xff]  }
 0x1ce   :  { %4931 = vmatprep.subr.bf16.mxu1 %v5659_v10 }
 0x1d0   :  { %3027 = vmatmul.mubr.bf16.vlgmr.msra.gmra.mrb[24].mxu1 %v2530_v42  ;;  %v7252_v42 = vld [vmem:[%s7784_s11 + $0x60] ss:$16 sps:$4 sm:$0xff]  }
 0x1d1   :  { %3034 = vmatprep.mubr.bf16.mxu1 %v2537_v0  ;;  %4932 = vmatpush3.bf16.msra.mxu1 %v5660_v11 }
 0x1d2   :  { %4933 = vmatprep.subr.bf16.mxu1 %v5661_v12  ;;  %3842 = vmatpush1.bf16.msra.mxu0 %v7252_v42  ;;  %v5686_v12 = vld [vmem:[%s7785_s8 + $0x48] sm:$0xff]  }
 0x1d3   :  { %3843 = vmatprep.subr.bf16.mxu0 %v7258_v43 }
 0x1d5   :  { %4934 = vmatpush3.bf16.msra.mxu1 %v5662_v14 }
 0x1d6   :  { %4935 = vmatprep.subr.bf16.mxu1 %v5663_v15  ;;  %3844 = vmatpush1.bf16.msra.mxu0 %v7263_v45 }
 0x1d7   :  { %3845 = vmatprep.subr.bf16.mxu0 %v7268_v46 }
 0x1d8   :  { %3035 = vmatmul.mubr.bf16.gmra.mrb[28].mxu1 %v2536_v62 }
 0x1d9   :  { %3042 = vmatprep.mubr.bf16.mxu1 %v2543_v7  ;;  %4936 = vmatpush3.bf16.msra.mxu1 %v5664_v16 }
 0x1da   :  { %4937 = vmatprep.subr.bf16.mxu1 %v5665_v17  ;;  %3846 = vmatpush1.bf16.msra.mxu0 %v7275_v47 }
 0x1dd   :  { %4938 = vmatpush3.bf16.msra.mxu1 %v5666_v18  ;;  %v5687_v18 = vld [vmem:[%s7785_s8 + $0x8] sm:$0xff]  }
 0x1de   :  { %4939 = vmatprep.subr.bf16.mxu1 %v5667_v20 }
 0x1e0   :  { %3043 = vmatmul.mubr.bf16.gmra.mrb[32].mxu1 %v2542_v6 }
 0x1e1   :  { %4940 = vmatpush3.bf16.msra.mxu1 %v5668_v21  ;;  %v5691_v21 = vld [vmem:[%s7785_s8 + $0x50] sm:$0xff]  }
 0x1e2   :  { %4941 = vmatprep.subr.bf16.mxu1 %v5669_v23 }
 0x1e5   :  { %4942 = vmatpush3.bf16.msra.mxu1 %v5670_v24 }
 0x1e6   :  { %4943 = vmatprep.subr.bf16.mxu1 %v5671_v26 }
 0x1e9   :  { %4944 = vmatpush3.bf16.msra.mxu1 %v5672_v9 }
 0x1ea   :  { %4945 = vmatprep.subr.bf16.mxu1 %v5673_v13  ;;  %v5692_v13 = vld [vmem:[%s7785_s8 + $0x10] sm:$0xff]  }
 0x1ed   :  { %4946 = vmatpush3.bf16.msra.mxu1 %v5674_v19  ;;  %v5696_v19 = vld [vmem:[%s7785_s8 + $0x58] sm:$0xff]  }
 0x1ee   :  { %4965 = vmatprep.subr.bf16.mxu1 %v5681_v35 }
 0x25c   :  { %v2463_v52 = vpop.f32.mrb[12].mxu0 }
 0x25d   :  { %v5069_v53 = vadd.f32 %v2463_v52, %v384_v50  ;;  %v2465_v54 = vpop.f32.mrb[13].mxu0 }
 0x25e   :  { %v5070_v55 = vadd.f32 %v2465_v54, %v388_v51  ;;  %v2467_v56 = vpop.f32.mrb[14].mxu0 }
 0x25f   :  { %5851 = vtanh.f32 %v5069_v53  ;;  %v5071_v57 = vadd.f32 %v2467_v56, %v384_v50  ;;  %v2469_v58 = vpop.f32.mrb[15].mxu0 }
 0x260   :  { %5853 = vtanh.f32 %v5070_v55  ;;  %v5072_v59 = vadd.f32 %v2469_v58, %v388_v51 }
 0x261   :  { %5855 = vtanh.f32 %v5071_v57 }
 0x262   :  { %5857 = vtanh.f32 %v5072_v59 }
 0x264   :  { %v2473_v60 = vpop.f32.mrb[16].mxu0 }
 0x265   :  { %v5073_v41 = vadd.f32 %v2473_v60, %v384_v50  ;;  %v2475_v61 = vpop.f32.mrb[17].mxu0 }
 0x266   :  { %v5074_v44 = vadd.f32 %v2475_v61, %v388_v51  ;;  %v2477_v62 = vpop.f32.mrb[18].mxu0 }
 0x267   :  { %5859 = vtanh.f32 %v5073_v41  ;;  %v5075_v63 = vadd.f32 %v2477_v62, %v384_v50  ;;  %v2479_v31 = vpop.f32.mrb[19].mxu0 }
 0x268   :  { %5861 = vtanh.f32 %v5074_v44  ;;  %v5076_v0 = vadd.f32 %v2479_v31, %v388_v51 }
 0x269   :  { %v5852_v1 = vpop.eup %5851  ;;  %5863 = vtanh.f32 %v5075_v63 }
 0x26a   :  { %v5854_v2 = vpop.eup %5853  ;;  %5865 = vtanh.f32 %v5076_v0 }
 0x26b   :  { %v5856_v3 = vpop.eup %5855 }
 0x26c   :  { %v5858_v4 = vpop.eup %5857  ;;  %v2483_v25 = vpop.f32.mrb[20].mxu0  ;;  %v2532_v28 = vpack.c.bf16 %v5856_v3, %v5852_v1 }
 0x26d   :  { %v5077_v5 = vadd.f32 %v2483_v25, %v384_v50  ;;  %v2485_v6 = vpop.f32.mrb[21].mxu0  ;;  %v2533_v7 = vpack.c.bf16 %v5858_v4, %v5854_v2  ;;  %v4704_v25 = vld [vmem:[%s7786_s5] ss:$0 sm:$0xff] }
 0x26e   :  { %v5078_v10 = vadd.f32 %v2485_v6, %v388_v51  ;;  %v2487_v11 = vpop.f32.mrb[22].mxu0 }
 0x26f   :  { %5867 = vtanh.f32 %v5077_v5  ;;  %v5079_v14 = vadd.f32 %v2487_v11, %v384_v50  ;;  %v2489_v15 = vpop.f32.mrb[23].mxu0  ;;  %3083 = vmatprep.mubr.bf16.mxu1 %v2533_v7 }
 0x270   :  { %5869 = vtanh.f32 %v5078_v10  ;;  %v5080_v16 = vadd.f32 %v2489_v15, %v388_v51  ;;  %3084 = vmatmul.mubr.bf16.vlgmr.msra.gmra.mrb[36].mxu1 %v2532_v28 }
 0x271   :  { %v5860_v17 = vpop.eup %5859  ;;  %5871 = vtanh.f32 %v5079_v14  ;;  %4966 = vmatpush3.bf16.msra.mxu1 %v5682_v8 }
 0x272   :  { %v5862_v20 = vpop.eup %5861  ;;  %5873 = vtanh.f32 %v5080_v16  ;;  %4967 = vmatprep.subr.bf16.mxu1 %v5686_v12 }
 0x273   :  { %v5864_v23 = vpop.eup %5863 }
 0x274   :  { %v5866_v24 = vpop.eup %5865  ;;  %v2538_v26 = vpack.c.bf16 %v5864_v23, %v5860_v17 }
 0x275   :  { %v2539_v9 = vpack.c.bf16 %v5866_v24, %v5862_v20  ;;  %4968 = vmatpush3.bf16.msra.mxu1 %v5687_v18 }
 0x276   :  { %4969 = vmatprep.subr.bf16.mxu1 %v5691_v21 }
 0x277   :  { %3091 = vmatprep.mubr.bf16.mxu1 %v2539_v9 }
 0x278   :  { %3092 = vmatmul.mubr.bf16.gmra.mrb[40].mxu1 %v2538_v26 }
 0x279   :  { %v5868_v35 = vpop.eup %5867  ;;  %4970 = vmatpush3.bf16.msra.mxu1 %v5692_v13 }
 0x27a   :  { %v5870_v49 = vpop.eup %5869  ;;  %4971 = vmatprep.subr.bf16.mxu1 %v5696_v19 }
 0x27b   :  { %v5872_v50 = vpop.eup %5871 }
 0x27c   :  { %v5874_v51 = vpop.eup %5873  ;;  %v2544_v52 = vpack.c.bf16 %v5872_v50, %v5868_v35 }
 0x27d   :  { %v2545_v53 = vpack.c.bf16 %v5874_v51, %v5870_v49  ;;  %4972 = vmatpush3.bf16.msra.mxu1 %v5697_v48 }
 0x27f   :  { %3099 = vmatprep.mubr.bf16.mxu1 %v2545_v53 }
 0x280   :  { %3100 = vmatmul.mubr.bf16.gmra.mrb[44].mxu1 %v2544_v52 }
 0x283   :  { %v4879_v54 = vpop.f32.mrb[12].mxu1 }
 0x284   :  { %v4880_v55 = vpop.f32.mrb[13].mxu1 }
 0x285   :  { %v4881_v56 = vadd.f32 %v4880_v55, %v4879_v54  ;;  %v4882_v57 = vpop.f32.mrb[14].mxu1 }
 0x286   :  { %v4883_v58 = vpop.f32.mrb[15].mxu1 }
 0x287   :  { %v4884_v59 = vadd.f32 %v4883_v58, %v4882_v57  ;;  %v2972_v6 = vadd.f32 %v4881_v56, %v4704_v25  ;;  %v5701_v56 = vld [vmem:[%s7785_s8 + $0x60] sm:$0xff]  }
 0x288   :  { %v5702_v57 = vld [vmem:[%s7785_s8 + $0x20] sm:$0xff]   ;;  %4973 = vmatprep.subr.bf16.mxu1 %v5701_v56 }
 0x289   :  { %v2975_v11 = vadd.f32 %v4884_v59, %v4704_v25  ;;  %v7321_v58 = vld [vmem:[%s7784_s11 + $0xc4] ss:$16 sps:$4 sm:$0xff]   ;;  %4974 = vmatpush3.bf16.msra.mxu1 %v5702_v57  ;;  %v7326_v59 = vld [vmem:[%s7784_s11 + $0xc0] ss:$16 sps:$4 sm:$0xff]  }
 0x28a   :  { %3847 = vmatprep.subr.bf16.mxu0 %v7321_v58  ;;  %v5721_v56 = vld [vmem:[%s7787_s10 + $0x40] ss:$16 sps:$4 sm:$0xff]   ;;  %v5726_v57 = vld [vmem:[%s7787_s10 + $0x64] ss:$16 sps:$4 sm:$0xff]  }
 0x28b   :  { %v4885_v60 = vpop.f32.mrb[16].mxu1  ;;  %3848 = vmatpush1.bf16.msra.mxu0 %v7326_v59 }
 0x28c   :  { %v4886_v41 = vpop.f32.mrb[17].mxu1 }
 0x28d   :  { %v4887_v61 = vadd.f32 %v4886_v41, %v4885_v60  ;;  %v4888_v44 = vpop.f32.mrb[18].mxu1  ;;  %v5706_v60 = vld [vmem:[%s7785_s8 + $0x68] sm:$0xff]  }
 0x28e   :  { %v4889_v62 = vpop.f32.mrb[19].mxu1  ;;  %v5707_v41 = vld [vmem:[%s7785_s8 + $0x28] sm:$0xff]   ;;  %4975 = vmatprep.subr.bf16.mxu1 %v5706_v60  ;;  %v5727_v60 = vld [vmem:[%s7787_s10 + $0x80] ss:$16 sps:$4 sm:$0xff]  }
 0x28f   :  { %v4890_v63 = vadd.f32 %v4889_v62, %v4888_v44  ;;  %v2980_v18 = vadd.f32 %v4887_v61, %v4704_v25  ;;  %v7339_v61 = vld [vmem:[%s7784_s11 + $0xe4] ss:$16 sps:$4 sm:$0xff]   ;;  %4976 = vmatpush3.bf16.msra.mxu1 %v5707_v41  ;;  %v7344_v44 = vld [vmem:[%s7784_s11 + $0xe0] ss:$16 sps:$4 sm:$0xff]  }
 0x290   :  { %3849 = vmatprep.subr.bf16.mxu0 %v7339_v61  ;;  %v5711_v62 = vld [vmem:[%s7785_s8 + $0x70] sm:$0xff]  }
 0x291   :  { %v2983_v24 = vadd.f32 %v4890_v63, %v4704_v25  ;;  %3850 = vmatpush1.bf16.msra.mxu0 %v7344_v44  ;;  %v5712_v63 = vld [vmem:[%s7785_s8 + $0x30] sm:$0xff]   ;;  %4977 = vmatprep.subr.bf16.mxu1 %v5711_v62 }
 0x292   :  { %3946 = vmatprep.subr.bf16.mxu0 %v7213_v33  ;;  %v5732_v41 = vld [vmem:[%s7787_s10 + $0xa4] ss:$16 sps:$4 sm:$0xff]   ;;  %v5730_v62 = vld [vmem:[%s7787_s10 + $0xa0] ss:$16 sps:$4 sm:$0xff]  }
 0x293   :  { %v4891_v31 = vpop.f32.mrb[20].mxu1  ;;  %4978 = vmatpush3.bf16.msra.mxu1 %v5712_v63  ;;  %v5735_v63 = vld [vmem:[%s7787_s10 + $0xc4] ss:$16 sps:$4 sm:$0xff]  }
 0x294   :  { %v4892_v0 = vpop.f32.mrb[21].mxu1 }
 0x295   :  { %v4893_v1 = vadd.f32 %v4892_v0, %v4891_v31  ;;  %v4894_v2 = vpop.f32.mrb[22].mxu1  ;;  %v5937_v31 = vmov 0   ;;  %v5713_v0 = vld [vmem:[%s7785_s8 + $0x78] sm:$0xff]  }
 0x296   :  { %v4895_v3 = vpop.f32.mrb[23].mxu1  ;;  %3867 = vmatprep.mubr.bf16.mxu0 %v5937_v31  ;;  %4979 = vmatprep.subr.bf16.mxu1 %v5713_v0  ;;  %v5733_v0 = vld [vmem:[%s7787_s10 + $0xc0] ss:$16 sps:$4 sm:$0xff]  }
 0x297   :  { %v4896_v4 = vadd.f32 %v4895_v3, %v4894_v2  ;;  %v2988_v48 = vadd.f32 %v4893_v1, %v4704_v25  ;;  %v5714_v1 = vld [vmem:[%s7785_s8 + $0x38] sm:$0xff]   ;;  %v5717_v2 = vld [vmem:[%s7787_s10 + $0x4] ss:$16 sps:$4 sm:$0xff]  }
 0x298   :  { %4980 = vmatpush3.bf16.msra.mxu1 %v5714_v1  ;;  %v5738_v1 = vld [vmem:[%s7787_s10 + $0xe4] ss:$16 sps:$4 sm:$0xff]  }
 0x299   :  { %v2991_v52 = vadd.f32 %v4896_v4, %v4704_v25  ;;  %3572 = vmatprep.subr.bf16.mxu1 %v5717_v2  ;;  %v5736_v2 = vld [vmem:[%s7787_s10 + $0xe0] ss:$16 sps:$4 sm:$0xff]  }
 0x2a3   :  { %v4913_v28 = vpop.f32.mrb[24].mxu1 }
 0x2a4   :  { %v4914_v5 = vpop.f32.mrb[25].mxu1 }
 0x2a5   :  { %v4915_v7 = vadd.f32 %v4914_v5, %v4913_v28  ;;  %v4916_v8 = vpop.f32.mrb[26].mxu1 }
 0x2a6   :  { %v4917_v10 = vpop.f32.mrb[27].mxu1 }
 0x2a7   :  { %v3029_v12 = vadd.f32 %v4915_v7, %v2972_v6  ;;  %v4918_v14 = vadd.f32 %v4917_v10, %v4916_v8 }
 0x2a9   :  { %v3032_v15 = vadd.f32 %v4918_v14, %v2975_v11 }
 0x2ab   :  { %v4919_v16 = vpop.f32.mrb[28].mxu1 }
 0x2ac   :  { %v4920_v17 = vpop.f32.mrb[29].mxu1 }
 0x2ad   :  { %v4921_v20 = vadd.f32 %v4920_v17, %v4919_v16  ;;  %v4922_v21 = vpop.f32.mrb[30].mxu1 }
 0x2ae   :  { %v4923_v23 = vpop.f32.mrb[31].mxu1 }
 0x2af   :  { %v3037_v26 = vadd.f32 %v4921_v20, %v2980_v18  ;;  %v4924_v9 = vadd.f32 %v4923_v23, %v4922_v21  ;;  %v5715_v23 = vld [vmem:[%s7787_s10] ss:$16 sps:$4 sm:$0xff]  }
 0x2b1   :  { %v3040_v13 = vadd.f32 %v4924_v9, %v2983_v24 }
 0x2b3   :  { %v4925_v19 = vpop.f32.mrb[32].mxu1 }
 0x2b4   :  { %v4926_v35 = vpop.f32.mrb[33].mxu1 }
 0x2b5   :  { %v4927_v49 = vadd.f32 %v4926_v35, %v4925_v19  ;;  %v4928_v50 = vpop.f32.mrb[34].mxu1  ;;  %v5718_v35 = vld [vmem:[%s7787_s10 + $0x20] ss:$16 sps:$4 sm:$0xff]  }
 0x2b6   :  { %v4929_v51 = vpop.f32.mrb[35].mxu1 }
 0x2b7   :  { %v7308_v53 = vadd.f32 %v4927_v49, %v2988_v48  ;;  %v4930_v54 = vadd.f32 %v4929_v51, %v4928_v50  ;;  %v5723_v49 = vld [vmem:[%s7787_s10 + $0x44] ss:$16 sps:$4 sm:$0xff]  }
 0x2b9   :  { %v7310_v55 = vadd.f32 %v4930_v54, %v2991_v52 }
 0x343   :  { %v4947_v3 = vpop.f32.mrb[36].mxu1 }
 0x344   :  { %v4948_v4 = vpop.f32.mrb[37].mxu1 }
 0x345   :  { %v4949_v25 = vadd.f32 %v4948_v4, %v4947_v3  ;;  %v4950_v28 = vpop.f32.mrb[38].mxu1  ;;  %v5741_v3 = vld [vmem:[%s7787_s10 + $0xc] ss:$16 sps:$4 sm:$0xff]   ;;  %v5739_v4 = vld [vmem:[%s7787_s10 + $0x8] ss:$16 sps:$4 sm:$0xff]  }
 0x346   :  { %v4951_v5 = vpop.f32.mrb[39].mxu1 }
 0x347   :  { %v3086_v6 = vadd.f32 %v4949_v25, %v3029_v12  ;;  %v4952_v7 = vadd.f32 %v4951_v5, %v4950_v28  ;;  %v5744_v25 = vld [vmem:[%s7787_s10 + $0x2c] ss:$16 sps:$4 sm:$0xff]   ;;  %v5742_v28 = vld [vmem:[%s7787_s10 + $0x28] ss:$16 sps:$4 sm:$0xff]  }
 0x348   :  { %v5747_v5 = vld [vmem:[%s7787_s10 + $0x4c] ss:$16 sps:$4 sm:$0xff]  }
 0x349   :  { %v3089_v8 = vadd.f32 %v4952_v7, %v3032_v15  ;;  %v3147_v24 = vpack.c.bf16 %v3086_v6, %v3086_v6  ;;  %v5745_v6 = vld [vmem:[%s7787_s10 + $0x48] ss:$16 sps:$4 sm:$0xff]  }
 0x34b   :  { %v7365_v10 = vpack.c.bf16 %v3089_v8, %v3089_v8  ;;  %v4953_v11 = vpop.f32.mrb[40].mxu1  ;;  %v5750_v8 = vld [vmem:[%s7787_s10 + $0x6c] ss:$16 sps:$4 sm:$0xff]  }
 0x34c   :  { %v4954_v14 = vpop.f32.mrb[41].mxu1 }
 0x34d   :  { %v4955_v16 = vadd.f32 %v4954_v14, %v4953_v11  ;;  %v4956_v17 = vpop.f32.mrb[42].mxu1  ;;  %3868 = vmatmul.mubr.bf16.vlgmr.msra.gmra.mrb[24].mxu0 %v7365_v10  ;;  %v5748_v11 = vld [vmem:[%s7787_s10 + $0x68] ss:$16 sps:$4 sm:$0xff]   ;;  %v5753_v14 = vld [vmem:[%s7787_s10 + $0x8c] ss:$16 sps:$4 sm:$0xff]  }
 0x34e   :  { %v4957_v18 = vpop.f32.mrb[43].mxu1  ;;  %3947 = vmatpush1.bf16.msra.mxu0 %v7208_v22  ;;  %3978 = vmatprep.mubr.bf16.mxu0 %v5937_v31  ;;  %v5720_v22 = vld [vmem:[%s7787_s10 + $0x24] ss:$16 sps:$4 sm:$0xff]  }
 0x34f   :  { %v7370_v20 = vadd.f32 %v4955_v16, %v3037_v26  ;;  %v4958_v21 = vadd.f32 %v4957_v18, %v4956_v17  ;;  %3948 = vmatprep.subr.bf16.mxu0 %v7218_v34  ;;  %v5751_v16 = vld [vmem:[%s7787_s10 + $0x88] ss:$16 sps:$4 sm:$0xff]   ;;  %v5756_v17 = vld [vmem:[%s7787_s10 + $0xac] ss:$16 sps:$4 sm:$0xff]  }
 0x350   :  { %v5754_v18 = vld [vmem:[%s7787_s10 + $0xa8] ss:$16 sps:$4 sm:$0xff]  }
 0x351   :  { %v3097_v12 = vadd.f32 %v4958_v21, %v3040_v13  ;;  %v3148_v15 = vpack.c.bf16 %v7370_v20, %v7370_v20  ;;  %v5759_v21 = vld [vmem:[%s7787_s10 + $0xcc] ss:$16 sps:$4 sm:$0xff]  }
 0x352   :  { %3949 = vmatpush1.bf16.msra.mxu0 %v7228_v36 }
 0x353   :  { %v4959_v26 = vpop.f32.mrb[44].mxu1  ;;  %3316 = vmatprep.mubr.bf16.mxu1 %v3148_v15  ;;  %3950 = vmatprep.subr.bf16.mxu0 %v7234_v37  ;;  %v5762_v15 = vld [vmem:[%s7787_s10 + $0xec] ss:$16 sps:$4 sm:$0xff]  }
 0x354   :  { %v4960_v9 = vpop.f32.mrb[45].mxu1  ;;  %3317 = vmatmul.mubr.bf16.vlgmr.msra.gmra.mrb[48].mxu1 %v3147_v24  ;;  %v7492_v24 = vld [vmem:[%s7784_s11 + $0xc] ss:$16 sps:$4 sm:$0xff]  }
 0x355   :  { %v4961_v13 = vadd.f32 %v4960_v9, %v4959_v26  ;;  %3573 = vmatpush1.bf16.msra.mxu1 %v5715_v23  ;;  %v4962_v19 = vpop.f32.mrb[46].mxu1  ;;  %3604 = vmatprep.mubr.bf16.mxu1 %v5937_v31  ;;  %v5760_v23 = vld [vmem:[%s7787_s10 + $0xe8] ss:$16 sps:$4 sm:$0xff]   ;;  %v7503_v26 = vld [vmem:[%s7784_s11 + $0x2c] ss:$16 sps:$4 sm:$0xff]  }
 0x356   :  { %v4963_v48 = vpop.f32.mrb[47].mxu1  ;;  %3574 = vmatprep.subr.bf16.mxu1 %v5720_v22  ;;  %3951 = vmatpush1.bf16.msra.mxu0 %v7240_v38  ;;  %v7497_v22 = vld [vmem:[%s7784_s11 + $0x8] ss:$16 sps:$4 sm:$0xff]  }
 0x357   :  { %v3102_v50 = vadd.f32 %v4961_v13, %v7308_v53  ;;  %v4964_v51 = vadd.f32 %v4963_v48, %v4962_v19  ;;  %3952 = vmatprep.subr.bf16.mxu0 %v7246_v40  ;;  %v5724_v53 = vld [vmem:[%s7787_s10 + $0x60] ss:$16 sps:$4 sm:$0xff]   ;;  %v7510_v9 = vld [vmem:[%s7784_s11 + $0x28] ss:$16 sps:$4 sm:$0xff]   ;;  %v7517_v13 = vld [vmem:[%s7784_s11 + $0x4c] ss:$16 sps:$4 sm:$0xff]  }
 0x358   :  { %v7523_v19 = vld [vmem:[%s7784_s11 + $0x48] ss:$16 sps:$4 sm:$0xff]  }
 0x359   :  { %v7393_v52 = vpack.c.bf16 %v3102_v50, %v3097_v12  ;;  %v3105_v54 = vadd.f32 %v4964_v51, %v7310_v55  ;;  %3575 = vmatpush1.bf16.msra.mxu1 %v5718_v35  ;;  %v5729_v55 = vld [vmem:[%s7787_s10 + $0x84] ss:$16 sps:$4 sm:$0xff]   ;;  %v5757_v12 = vld [vmem:[%s7787_s10 + $0xc8] ss:$16 sps:$4 sm:$0xff]   ;;  %v7529_v35 = vld [vmem:[%s7784_s11 + $0x6c] ss:$16 sps:$4 sm:$0xff]  }
 0x35a   :  { %3576 = vmatprep.subr.bf16.mxu1 %v5723_v49  ;;  %3953 = vmatpush1.bf16.msra.mxu0 %v7252_v42  ;;  %v7535_v48 = vld [vmem:[%s7784_s11 + $0x68] ss:$16 sps:$4 sm:$0xff]   ;;  %v7542_v49 = vld [vmem:[%s7784_s11 + $0x8c] ss:$16 sps:$4 sm:$0xff]  }
 0x35b   :  { %3954 = vmatprep.subr.bf16.mxu0 %v7258_v43  ;;  %v3325_v7 = vpack.c.bf16 %v3105_v54, %v3105_v54  ;;  %v7548_v50 = vld [vmem:[%s7784_s11 + $0x88] ss:$16 sps:$4 sm:$0xff]   ;;  %v7554_v51 = vld [vmem:[%s7784_s11 + $0xac] ss:$16 sps:$4 sm:$0xff]  }
 0x35c   :  { %v7566_v54 = vld [vmem:[%s7784_s11 + $0xcc] ss:$16 sps:$4 sm:$0xff]  }
 0x35d   :  { %3577 = vmatpush1.bf16.msra.mxu1 %v5721_v56  ;;  %v7572_v56 = vld [vmem:[%s7784_s11 + $0xc8] ss:$16 sps:$4 sm:$0xff]  }
 0x35e   :  { %3578 = vmatprep.subr.bf16.mxu1 %v5726_v57  ;;  %3955 = vmatpush1.bf16.msra.mxu0 %v7263_v45  ;;  %v7578_v57 = vld [vmem:[%s7784_s11 + $0xec] ss:$16 sps:$4 sm:$0xff]  }
 0x35f   :  { %3956 = vmatprep.subr.bf16.mxu0 %v7268_v46 }
 0x361   :  { %3579 = vmatpush1.bf16.msra.mxu1 %v5724_v53  ;;  %v7584_v53 = vld [vmem:[%s7784_s11 + $0xe8] ss:$16 sps:$4 sm:$0xff]  }
 0x362   :  { %3580 = vmatprep.subr.bf16.mxu1 %v5729_v55  ;;  %3957 = vmatpush1.bf16.msra.mxu0 %v7275_v47 }
 0x363   :  { %3958 = vmatprep.subr.bf16.mxu0 %v7321_v58 }
 0x365   :  { %3581 = vmatpush1.bf16.msra.mxu1 %v5727_v60 }
 0x366   :  { %3582 = vmatprep.subr.bf16.mxu1 %v5732_v41  ;;  %3959 = vmatpush1.bf16.msra.mxu0 %v7326_v59 }
 0x367   :  { %3960 = vmatprep.subr.bf16.mxu0 %v7339_v61 }
 0x369   :  { %3583 = vmatpush1.bf16.msra.mxu1 %v5730_v62 }
 0x36a   :  { %3584 = vmatprep.subr.bf16.mxu1 %v5735_v63  ;;  %3961 = vmatpush1.bf16.msra.mxu0 %v7344_v44 }
 0x36d   :  { %3585 = vmatpush1.bf16.msra.mxu1 %v5733_v0 }
 0x36e   :  { %3586 = vmatprep.subr.bf16.mxu1 %v5738_v1 }
 0x371   :  { %3587 = vmatpush1.bf16.msra.mxu1 %v5736_v2 }
 0x372   :  { %3623 = vmatprep.subr.bf16.mxu1 %v5741_v3  ;;  %v3390_v3 = vld [vmem:[%s7788_s12] sm:$0xf] }
 0x374   :  { %3605 = vmatmul.mubr.bf16.vlgmr.msra.gmra.mrb[52].mxu1 %v7393_v52 }
 0x375   :  { %3624 = vmatpush1.bf16.msra.mxu1 %v5739_v4  ;;  %3614 = vmatprep.mubr.bf16.mxu1 %v5937_v31  ;;  %v7614_v4 = vrot.slane %v3390_v3, %v367_v30 }
 0x376   :  { %3625 = vmatprep.subr.bf16.mxu1 %v5744_v25 }
 0x379   :  { %3626 = vmatpush1.bf16.msra.mxu1 %v5742_v28 }
 0x37a   :  { %3627 = vmatprep.subr.bf16.mxu1 %v5747_v5 }
 0x37c   :  { %3615 = vmatmul.mubr.bf16.gmra.mrb[56].mxu1 %v3325_v7 }
 0x37d   :  { %3628 = vmatpush1.bf16.msra.mxu1 %v5745_v6  ;;  %3655 = vmatprep.mubr.bf16.mxu1 %v5937_v31 }
 0x37e   :  { %3629 = vmatprep.subr.bf16.mxu1 %v5750_v8 }
 0x381   :  { %3630 = vmatpush1.bf16.msra.mxu1 %v5748_v11 }
 0x382   :  { %3631 = vmatprep.subr.bf16.mxu1 %v5753_v14 }
 0x385   :  { %3632 = vmatpush1.bf16.msra.mxu1 %v5751_v16 }
 0x386   :  { %3633 = vmatprep.subr.bf16.mxu1 %v5756_v17 }
 0x389   :  { %3634 = vmatpush1.bf16.msra.mxu1 %v5754_v18 }
 0x38a   :  { %3635 = vmatprep.subr.bf16.mxu1 %v5759_v21 }
 0x38d   :  { %3636 = vmatpush1.bf16.msra.mxu1 %v5757_v12 }
 0x38e   :  { %3637 = vmatprep.subr.bf16.mxu1 %v5762_v15 }
 0x391   :  { %3638 = vmatpush1.bf16.msra.mxu1 %v5760_v23  ;;  %v7628_v23 = vrot.slane %v3390_v3, %v375_v27 }
 0x392   :  { %3876 = vmatprep.subr.bf16.mxu1 %v7492_v24 }
 0x394   :  { %3656 = vmatmul.mubr.bf16.vlgmr.msra.gmra.mrb[60].mxu1 %v7393_v52  ;;  %v7560_v52 = vld [vmem:[%s7784_s11 + $0xa8] ss:$16 sps:$4 sm:$0xff]  }
 0x395   :  { %3877 = vmatpush1.bf16.msra.mxu1 %v7497_v22  ;;  %3665 = vmatprep.mubr.bf16.mxu1 %v5937_v31 }
 0x396   :  { %3878 = vmatprep.subr.bf16.mxu1 %v7503_v26 }
 0x399   :  { %3879 = vmatpush1.bf16.msra.mxu1 %v7510_v9 }
 0x39a   :  { %3880 = vmatprep.subr.bf16.mxu1 %v7517_v13 }
 0x39c   :  { %3666 = vmatmul.mubr.bf16.gmra.mrb[64].mxu1 %v3325_v7 }
 0x39d   :  { %3881 = vmatpush1.bf16.msra.mxu1 %v7523_v19  ;;  %3908 = vmatprep.mubr.bf16.mxu1 %v5937_v31 }
 0x39e   :  { %3882 = vmatprep.subr.bf16.mxu1 %v7529_v35 }
 0x3a1   :  { %3883 = vmatpush1.bf16.msra.mxu1 %v7535_v48 }
 0x3a2   :  { %3884 = vmatprep.subr.bf16.mxu1 %v7542_v49 }
 0x3a5   :  { %3885 = vmatpush1.bf16.msra.mxu1 %v7548_v50 }
 0x3a6   :  { %3886 = vmatprep.subr.bf16.mxu1 %v7554_v51 }
 0x3a9   :  { %3887 = vmatpush1.bf16.msra.mxu1 %v7560_v52 }
 0x3aa   :  { %3888 = vmatprep.subr.bf16.mxu1 %v7566_v54 }
 0x3ad   :  { %3889 = vmatpush1.bf16.msra.mxu1 %v7572_v56 }
 0x3ae   :  { %3890 = vmatprep.subr.bf16.mxu1 %v7578_v57 }
 0x3b1   :  { %3891 = vmatpush1.bf16.msra.mxu1 %v7584_v53 }
 0x3b2   :  { %3987 = vmatprep.subr.bf16.mxu1 %v7492_v24 }
 0x3b4   :  { %3909 = vmatmul.mubr.bf16.vlgmr.msra.gmra.mrb[68].mxu1 %v7365_v10 }
 0x3b5   :  { %3988 = vmatpush1.bf16.msra.mxu1 %v7497_v22  ;;  %4019 = vmatprep.mubr.bf16.mxu1 %v5937_v31 }
 0x3b6   :  { %3989 = vmatprep.subr.bf16.mxu1 %v7503_v26 }
 0x3b9   :  { %3990 = vmatpush1.bf16.msra.mxu1 %v7510_v9 }
 0x3ba   :  { %3991 = vmatprep.subr.bf16.mxu1 %v7517_v13 }
 0x3bd   :  { %3992 = vmatpush1.bf16.msra.mxu1 %v7523_v19 }
 0x3be   :  { %3993 = vmatprep.subr.bf16.mxu1 %v7529_v35 }
 0x3c1   :  { %3994 = vmatpush1.bf16.msra.mxu1 %v7535_v48 }
 0x3c2   :  { %3995 = vmatprep.subr.bf16.mxu1 %v7542_v49 }
 0x3c5   :  { %3996 = vmatpush1.bf16.msra.mxu1 %v7548_v50 }
 0x3c6   :  { %3997 = vmatprep.subr.bf16.mxu1 %v7554_v51 }
 0x3c9   :  { %3998 = vmatpush1.bf16.msra.mxu1 %v7560_v52 }
 0x3ca   :  { %3999 = vmatprep.subr.bf16.mxu1 %v7566_v54 }
 0x3cd   :  { %4000 = vmatpush1.bf16.msra.mxu1 %v7572_v56 }
 0x3ce   :  { %4001 = vmatprep.subr.bf16.mxu1 %v7578_v57 }
 0x3d1   :  { %4002 = vmatpush1.bf16.msra.mxu1 %v7584_v53 }
 0x3d2   :  { %4057 = vmatprep.subr.bf16.mxu1 %v7213_v33  ;;  %v7618_v33 = vrot.slane %v3390_v3, %v371_v32 }
 0x420   :  { %v3869_v10 = vpop.f32.mrb[24].mxu0 }
 0x421   :  { %v3871_v55 = vpop.f32.mrb[25].mxu0 }
 0x422   :  { %v3873_v60 = vpop.f32.mrb[26].mxu0 }
 0x423   :  { %v3874_v41 = vpop.f32.mrb[27].mxu0 }
 0x427   :  { %v4981_v62 = vpop.f32.mrb[48].mxu1 }
 0x428   :  { %v4982_v63 = vpop.f32.mrb[49].mxu1 }
 0x429   :  { %v7607_v0 = vadd.f32 %v4982_v63, %v4981_v62  ;;  %v4984_v1 = vpop.f32.mrb[50].mxu1 }
 0x42a   :  { %v4985_v2 = vpop.f32.mrb[51].mxu1 }
 0x447   :  { %v3606_v25 = vpop.f32.mrb[52].mxu1 }
 0x448   :  { %v3607_v28 = vadd.f32 %v3606_v25, %v7614_v4  ;;  %v3608_v5 = vpop.f32.mrb[53].mxu1 }
 0x449   :  { %v3609_v6 = vadd.f32 %v3608_v5, %v7618_v33  ;;  %v7622_v7 = vpop.f32.mrb[54].mxu1 }
 0x44a   :  { %v3917_v8 = vadd.f32 %v3869_v10, %v3607_v28  ;;  %v7624_v11 = vpop.f32.mrb[55].mxu1  ;;  %v7632_v10 = vrot.slane %v3390_v3, %v379_v39 }
 0x44b   :  { %v3918_v14 = vadd.f32 %v3871_v55, %v3609_v6 }
 0x44c   :  { %v4836_v12 = vmul.f32 -1.442695, %v3917_v8 }
 0x44d   :  { %v4837_v21 = vmul.f32 -1.442695, %v3918_v14 }
 0x44f   :  { %5875 = vpow2.f32 %v4837_v21 }
 0x450   :  { %5877 = vpow2.f32 %v4836_v12 }
 0x459   :  { %v5876_v32 = vpop.eup %5875 }
 0x45a   :  { %v5878_v15 = vpop.eup %5877  ;;  %v3930_v60 = vadd.f32 1.0, %v5876_v32 }
 0x45b   :  { %v3924_v55 = vadd.f32 1.0, %v5878_v15 }
 0x45c   :  { %5879 = vrcp.f32 %v3930_v60  ;;  %v5936_v60 = vld [vmem:[%s7784_s11] ss:$16 sps:$4 sm:$0xff]  }
 0x45d   :  { %5881 = vrcp.f32 %v3924_v55 }
 0x466   :  { %v5880_v29 = vpop.eup %5879 }
 0x467   :  { %v3657_v16 = vpop.f32.mrb[60].mxu1  ;;  %v5882_v39 = vpop.eup %5881  ;;  %v3940_v6 = vmul.f32 %v5880_v29, %v7370_v20 }
 0x468   :  { %v3659_v17 = vpop.f32.mrb[61].mxu1  ;;  %v3658_v41 = vadd.f32 %v3657_v16, %v7628_v23 }
 0x469   :  { %v3661_v30 = vpop.f32.mrb[62].mxu1  ;;  %v3660_v62 = vadd.f32 %v3659_v17, %v7632_v10 }
 0x46a   :  { %v3663_v18 = vpop.f32.mrb[63].mxu1 }
 0x487   :  { %v3910_v63 = vpop.f32.mrb[68].mxu1 }
 0x488   :  { %v3919_v1 = vadd.f32 %v3910_v63, %v3658_v41  ;;  %v3912_v2 = vpop.f32.mrb[69].mxu1 }
 0x489   :  { %v3920_v25 = vadd.f32 %v3912_v2, %v3660_v62  ;;  %v3914_v28 = vpop.f32.mrb[70].mxu1 }
 0x48a   :  { %5883 = vtanh.f32 %v3919_v1  ;;  %v3915_v27 = vpop.f32.mrb[71].mxu1 }
 0x48b   :  { %v4838_v5 = vmul.f32 -1.442695, %v3920_v25 }
 0x48d   :  { %5885 = vpow2.f32 %v4838_v5 }
 0x494   :  { %v5884_v3 = vpop.eup %5883 }
 0x495   :  { %v3941_v8 = vmul.f32 %v5884_v3, %v5882_v39 }
 0x497   :  { %v5886_v14 = vpop.eup %5885  ;;  %v7637_v16 = vadd.f32 %v3941_v8, %v3940_v6 }
 0x498   :  { %v3937_v17 = vadd.f32 1.0, %v5886_v14 }
 0x499   :  { %5887 = vtanh.f32 %v7637_v16 }
 0x49a   :  { %5889 = vrcp.f32 %v3937_v17 }
 0x4a3   :  { %v5888_v21 = vpop.eup %5887 }
 0x4a4   :  { %v5890_v12 = vpop.eup %5889 }
 0x4a5   :  { %v3944_v32 = vmul.f32 %v5890_v12, %v5888_v21 }
 0x4a7   :  { %v3945_v15 = vpack.c.bf16 %v3944_v32, %v3944_v32 }
 0x4a9   :  { %3979 = vmatmul.mubr.bf16.vlgmr.msra.gmra.mrb[28].mxu0 %v3945_v15  ;;  %4020 = vmatmul.mubr.bf16.vlgmr.msra.gmra.mrb[72].mxu1 %v3945_v15 }
 0x4aa   :  { %4058 = vmatpush1.bf16.msra.mxu1 %v5936_v60  ;;  %4089 = vmatprep.mubr.bf16.mxu1 %v5937_v31 }
 0x4ab   :  { %4059 = vmatprep.subr.bf16.mxu1 %v7218_v34  ;;  %v3611_v34 = vadd.f32 %v7622_v7, %v7614_v4 }
 0x4ae   :  { %4060 = vmatpush1.bf16.msra.mxu1 %v7228_v36  ;;  %v3662_v36 = vadd.f32 %v3661_v30, %v7628_v23 }
 0x4af   :  { %4061 = vmatprep.subr.bf16.mxu1 %v7234_v37  ;;  %v3613_v37 = vadd.f32 %v7624_v11, %v7618_v33 }
 0x4b2   :  { %4062 = vmatpush1.bf16.msra.mxu1 %v7240_v38  ;;  %v3664_v38 = vadd.f32 %v3663_v18, %v7632_v10 }
 0x4b3   :  { %4063 = vmatprep.subr.bf16.mxu1 %v7246_v40 }
 0x4b6   :  { %4064 = vmatpush1.bf16.msra.mxu1 %v7252_v42 }
 0x4b7   :  { %4065 = vmatprep.subr.bf16.mxu1 %v7258_v43 }
 0x4ba   :  { %4066 = vmatpush1.bf16.msra.mxu1 %v7263_v45 }
 0x4bb   :  { %4067 = vmatprep.subr.bf16.mxu1 %v7268_v46 }
 0x4be   :  { %4068 = vmatpush1.bf16.msra.mxu1 %v7275_v47 }
 0x4bf   :  { %4069 = vmatprep.subr.bf16.mxu1 %v7321_v58 }
 0x4c2   :  { %4070 = vmatpush1.bf16.msra.mxu1 %v7326_v59 }
 0x4c3   :  { %4071 = vmatprep.subr.bf16.mxu1 %v7339_v61 }
 0x4c6   :  { %4072 = vmatpush1.bf16.msra.mxu1 %v7344_v44 }
 0x4c7   :  { %4098 = vmatprep.subr.bf16.mxu1 %v7492_v24 }
 0x57c   :  { %v3980_v40 = vpop.f32.mrb[28].mxu0  ;;  %v4021_v42 = vpop.f32.mrb[72].mxu1 }
 0x57d   :  { %v4028_v43 = vadd.f32 %v3980_v40, %v3611_v34  ;;  %v4030_v45 = vadd.f32 %v4021_v42, %v3662_v36  ;;  %v3982_v46 = vpop.f32.mrb[29].mxu0  ;;  %v4023_v47 = vpop.f32.mrb[73].mxu1 }
 0x57e   :  { %v4029_v58 = vadd.f32 %v3982_v46, %v3613_v37  ;;  %v4031_v59 = vadd.f32 %v4023_v47, %v3664_v38  ;;  %v3984_v61 = vpop.f32.mrb[30].mxu0  ;;  %v4025_v44 = vpop.f32.mrb[74].mxu1 }
 0x57f   :  { %v4839_v20 = vmul.f32 -1.442695, %v4028_v43  ;;  %v3985_v24 = vpop.f32.mrb[31].mxu0  ;;  %v4026_v7 = vpop.f32.mrb[75].mxu1  ;;  %v5796_v44 = vld [vmem:[%s7790_s15 + $0x8] sm:$0xff]  }
 0x580   :  { %v4840_v55 = vmul.f32 -1.442695, %v4029_v58  ;;  %v4841_v30 = vmul.f32 -1.442695, %v4031_v59  ;;  %v5798_v24 = vld [vmem:[%s7790_s15 + $0x18] sm:$0xff]   ;;  %v5799_v7 = vld [vmem:[%s7790_s15 + $0x20] sm:$0xff]  }
 0x581   :  { %5891 = vpow2.f32 %v4839_v20  ;;  %v5797_v20 = vld [vmem:[%s7790_s15 + $0x10] sm:$0xff]  }
 0x582   :  { %5893 = vpow2.f32 %v4840_v55  ;;  %v5800_v55 = vld [vmem:[%s7790_s15 + $0x28] sm:$0xff]  }
 0x583   :  { %5895 = vpow2.f32 %v4841_v30  ;;  %v5801_v30 = vld [vmem:[%s7790_s15 + $0x30] sm:$0xff]  }
 0x584   :  { %5897 = vtanh.f32 %v4030_v45 }
 0x58b   :  { %v5892_v11 = vpop.eup %5891 }
 0x58c   :  { %v5894_v41 = vpop.eup %5893  ;;  %v4035_v18 = vadd.f32 1.0, %v5892_v11  ;;  %v5802_v11 = vld [vmem:[%s7790_s15 + $0x38] sm:$0xff]  }
 0x58d   :  { %v4041_v62 = vadd.f32 1.0, %v5894_v41  ;;  %v5896_v63 = vpop.eup %5895  ;;  %v3108_v41 = vld [vmem:[%s7791_s1] sm:$0xff] }
 0x58e   :  { %5899 = vrcp.f32 %v4035_v18  ;;  %v5898_v1 = vpop.eup %5897  ;;  %v4048_v27 = vadd.f32 1.0, %v5896_v63  ;;  %v3109_v18 = vrot.slane %v3108_v41, 4 }
 0x58f   :  { %5901 = vrcp.f32 %v4041_v62  ;;  %v3116_v62 = vmul.f32 %v3108_v41, %v3108_v41 }
 0x590   :  { %5903 = vrcp.f32 %v4048_v27  ;;  %v3110_v63 = vadd.f32 %v3109_v18, %v3108_v41 }
 0x598   :  { %v5900_v2 = vpop.eup %5899 }
 0x599   :  { %v5902_v25 = vpop.eup %5901  ;;  %v4052_v28 = vmul.f32 %v5900_v2, %v5898_v1  ;;  %v3117_v1 = vrot.slane %v3116_v62, 4  ;;  %v3111_v2 = vrot.slane %v3110_v63, 2 }
 0x59a   :  { %v4051_v5 = vmul.f32 %v5902_v25, %v7637_v16  ;;  %v5904_v39 = vpop.eup %5903 }
 0x59b   :  { %v3118_v25 = vadd.f32 %v3117_v1, %v3116_v62 }
 0x59c   :  { %v7666_v29 = vadd.f32 %v4052_v28, %v4051_v5  ;;  %v3112_v28 = vadd.f32 %v3111_v2, %v3110_v63 }
 0x59d   :  { %v3119_v27 = vrot.slane %v3118_v25, 2 }
 0x59e   :  { %5905 = vtanh.f32 %v7666_v29  ;;  %v3113_v5 = vrot.slane %v3112_v28, 1 }
 0x5a8   :  { %v5906_v3 = vpop.eup %5905 }
 0x5a9   :  { %v4055_v6 = vmul.f32 %v5906_v3, %v5904_v39  ;;  %v3114_v39 = vadd.f32 %v3113_v5, %v3112_v28 }
 0x5ab   :  { %v4056_v8 = vpack.c.bf16 %v4055_v6, %v4055_v6  ;;  %v3115_v6 = vmul.f32 0.5, %v3114_v39 }
 0x5ad   :  { %4090 = vmatmul.mubr.bf16.vlgmr.msra.gmra.mrb[56].mxu1 %v4056_v8 }
 0x5ae   :  { %4099 = vmatpush1.bf16.msra.mxu1 %v7497_v22  ;;  %4130 = vmatprep.mubr.bf16.mxu1 %v5937_v31  ;;  %v5787_v31 = vld [vmem:[%s7789_s13] sm:$0xff]   ;;  %v5938_v22 = vmov 0.0  }
 0x5af   :  { %4100 = vmatprep.subr.bf16.mxu1 %v7503_v26  ;;  %5005 = vmatprep.subr.bf16.mxu0 %v5938_v22  ;;  %v5788_v26 = vld [vmem:[%s7789_s13 + $0x8] sm:$0xff]  }
 0x5b0   :  { %5006 = vmatpush3.bf16.msra.mxu0 %v5787_v31  ;;  %5021 = vmatprep.mubr.msk.bf16.mxu0 %vm5939_vm0, %v5938_v22 }
 0x5b1   :  { %5007 = vmatprep.subr.bf16.mxu0 %v5938_v22 }
 0x5b2   :  { %4101 = vmatpush1.bf16.msra.mxu1 %v7510_v9  ;;  %v5789_v9 = vld [vmem:[%s7789_s13 + $0x10] sm:$0xff]  }
 0x5b3   :  { %4102 = vmatprep.subr.bf16.mxu1 %v7517_v13  ;;  %v5790_v13 = vld [vmem:[%s7789_s13 + $0x18] sm:$0xff]  }
 0x5b4   :  { %5008 = vmatpush3.bf16.msra.mxu0 %v5788_v26 }
 0x5b5   :  { %5009 = vmatprep.subr.bf16.mxu0 %v5938_v22 }
 0x5b6   :  { %4103 = vmatpush1.bf16.msra.mxu1 %v7523_v19  ;;  %v5791_v19 = vld [vmem:[%s7789_s13 + $0x20] sm:$0xff]  }
 0x5b7   :  { %4104 = vmatprep.subr.bf16.mxu1 %v7529_v35  ;;  %v5792_v35 = vld [vmem:[%s7789_s13 + $0x28] sm:$0xff]  }
 0x5b8   :  { %5010 = vmatpush3.bf16.msra.mxu0 %v5789_v9 }
 0x5b9   :  { %5011 = vmatprep.subr.bf16.mxu0 %v5938_v22 }
 0x5ba   :  { %4105 = vmatpush1.bf16.msra.mxu1 %v7535_v48  ;;  %v5793_v48 = vld [vmem:[%s7789_s13 + $0x30] sm:$0xff]  }
 0x5bb   :  { %4106 = vmatprep.subr.bf16.mxu1 %v7542_v49  ;;  %v5794_v49 = vld [vmem:[%s7789_s13 + $0x38] sm:$0xff]  }
 0x5bc   :  { %5012 = vmatpush3.bf16.msra.mxu0 %v5790_v13 }
 0x5bd   :  { %5013 = vmatprep.subr.bf16.mxu0 %v5938_v22 }
 0x5be   :  { %4107 = vmatpush1.bf16.msra.mxu1 %v7548_v50 }
 0x5bf   :  { %4108 = vmatprep.subr.bf16.mxu1 %v7554_v51 }
 0x5c0   :  { %5014 = vmatpush3.bf16.msra.mxu0 %v5791_v19  ;;  %v3127_v19 = vsub.f32 %v3108_v41, %v3115_v6 }
 0x5c1   :  { %5015 = vmatprep.subr.bf16.mxu0 %v5938_v22 }
 0x5c2   :  { %4109 = vmatpush1.bf16.msra.mxu1 %v7560_v52 }
 0x5c3   :  { %4110 = vmatprep.subr.bf16.mxu1 %v7566_v54 }
 0x5c4   :  { %5016 = vmatpush3.bf16.msra.mxu0 %v5792_v35 }
 0x5c5   :  { %5017 = vmatprep.subr.bf16.mxu0 %v5938_v22 }
 0x5c6   :  { %4111 = vmatpush1.bf16.msra.mxu1 %v7572_v56 }
 0x5c7   :  { %4112 = vmatprep.subr.bf16.mxu1 %v7578_v57 }
 0x5c8   :  { %5018 = vmatpush3.bf16.msra.mxu0 %v5793_v48 }
 0x5c9   :  { %5019 = vmatprep.subr.bf16.mxu0 %v5938_v22 }
 0x5ca   :  { %4113 = vmatpush1.bf16.msra.mxu1 %v7584_v53 }
 0x5cc   :  { %5020 = vmatpush3.bf16.msra.mxu0 %v5794_v49  ;;  %v4753_v49 = vld [vmem:[%s7792_s6] ss:$0 sm:$0xff] }
 0x5cd   :  { %4131 = vmatmul.mubr.bf16.vlgmr.msra.gmra.mrb[64].mxu1 %v4056_v8  ;;  %5025 = vmatprep.subr.bf16.mxu0 %v5938_v22 }
 0x680   :  { %v4091_v50 = vpop.f32.mrb[56].mxu1 }
 0x681   :  { %v4093_v51 = vpop.f32.mrb[57].mxu1  ;;  %v5081_v57 = vadd.f32 %v4091_v50, %v7614_v4 }
 0x682   :  { %v4095_v52 = vpop.f32.mrb[58].mxu1  ;;  %v5082_v56 = vadd.f32 %v4093_v51, %v7618_v33  ;;  %v4755_v51 = vld [vmem:[%s7793_s9] ss:$0 sm:$0xff] }
 0x683   :  { %v4096_v54 = vpop.f32.mrb[59].mxu1  ;;  %v4842_v14 = vmul.f32 -1.442695, %v5081_v57  ;;  %v4754_v52 = vld [vmem:[%s7794_s7] ss:$0 sm:$0xff] }
 0x684   :  { %v4843_v53 = vmul.f32 -1.442695, %v5082_v56  ;;  %v3319_v54 = vadd.f32 %v7607_v0, %v4755_v51  ;;  %v4845_v57 = vld [vmem:[%s7795_s14] ss:$0 sm:$0xff] }
 0x686   :  { %5907 = vpow2.f32 %v4843_v53 }
 0x687   :  { %5909 = vpow2.f32 %v4842_v14 }
 0x690   :  { %v5908_v16 = vpop.eup %5907 }
 0x691   :  { %v5910_v17 = vpop.eup %5909  ;;  %v4152_v21 = vadd.f32 1.0, %v5908_v16 }
 0x692   :  { %v4146_v12 = vadd.f32 1.0, %v5910_v17 }
 0x693   :  { %5911 = vrcp.f32 %v4152_v21 }
 0x694   :  { %5913 = vrcp.f32 %v4146_v12 }
 0x69d   :  { %v5912_v37 = vpop.eup %5911 }
 0x69e   :  { %v5914_v38 = vpop.eup %5913  ;;  %v4162_v42 = vmul.f32 %v5912_v37, %v7666_v29  ;;  %v3120_v29 = vadd.f32 %v3119_v27, %v3118_v25 }
 0x6a0   :  { %v4132_v32 = vpop.f32.mrb[64].mxu1  ;;  %v3121_v3 = vrot.slane %v3120_v29, 1 }
 0x6a1   :  { %v5083_v15 = vadd.f32 %v4132_v32, %v7628_v23  ;;  %v4134_v60 = vpop.f32.mrb[65].mxu1 }
 0x6a2   :  { %v5084_v34 = vadd.f32 %v4134_v60, %v7632_v10  ;;  %v4136_v36 = vpop.f32.mrb[66].mxu1  ;;  %v5795_v10 = vld [vmem:[%s7790_s15] sm:$0xff]   ;;  %v3122_v8 = vadd.f32 %v3121_v3, %v3120_v29 }
 0x6a3   :  { %5915 = vtanh.f32 %v5083_v15  ;;  %v4137_v33 = vpop.f32.mrb[67].mxu1  ;;  %v4854_v60 = vld [vmem:[%s7796_s16] ss:$0 sm:$0xff] }
 0x6a4   :  { %v4844_v4 = vmul.f32 -1.442695, %v5084_v34  ;;  %v3123_v31 = vmul.f32 0.5, %v3122_v8 }
 0x6a6   :  { %5917 = vpow2.f32 %v4844_v4 }
 0x6ad   :  { %v5916_v40 = vpop.eup %5915 }
 0x6ae   :  { %v4163_v43 = vmul.f32 %v5916_v40, %v5914_v38 }
 0x6b0   :  { %v5918_v45 = vpop.eup %5917  ;;  %v4164_v46 = vadd.f32 %v4163_v43, %v4162_v42 }
 0x6b1   :  { %v4159_v47 = vadd.f32 1.0, %v5918_v45 }
 0x6b2   :  { %5919 = vtanh.f32 %v4164_v46 }
 0x6b3   :  { %5921 = vrcp.f32 %v4159_v47 }
 0x6bc   :  { %v5920_v23 = vpop.eup %5919 }
 0x6bd   :  { %v5922_v58 = vpop.eup %5921 }
 0x6be   :  { %v4166_v59 = vmul.f32 %v5922_v58, %v5920_v23 }
 0x6c0   :  { %v4167_v61 = vpack.c.bf16 %v4166_v59, %v4166_v59 }
 0x6c2   :  { %5022 = vmatmul.mubr.bf16.vlgmr.msra.gmra.mrb[32].mxu0 %v4167_v61 }
 0x6c3   :  { %5026 = vmatpush3.bf16.msra.mxu0 %v5795_v10  ;;  %5041 = vmatprep.mubr.msk.bf16.mxu0 %vm5939_vm0, %v5938_v22 }
 0x6c4   :  { %5027 = vmatprep.subr.bf16.mxu0 %v5938_v22 }
 0x6c7   :  { %5028 = vmatpush3.bf16.msra.mxu0 %v5796_v44 }
 0x6c8   :  { %5029 = vmatprep.subr.bf16.mxu0 %v5938_v22 }
 0x6cb   :  { %5030 = vmatpush3.bf16.msra.mxu0 %v5797_v20 }
 0x6cc   :  { %5031 = vmatprep.subr.bf16.mxu0 %v5938_v22 }
 0x6cf   :  { %5032 = vmatpush3.bf16.msra.mxu0 %v5798_v24 }
 0x6d0   :  { %5033 = vmatprep.subr.bf16.mxu0 %v5938_v22 }
 0x6d3   :  { %5034 = vmatpush3.bf16.msra.mxu0 %v5799_v7 }
 0x6d4   :  { %5035 = vmatprep.subr.bf16.mxu0 %v5938_v22 }
 0x6d7   :  { %5036 = vmatpush3.bf16.msra.mxu0 %v5800_v55 }
 0x6d8   :  { %5037 = vmatprep.subr.bf16.mxu0 %v5938_v22 }
 0x6db   :  { %5038 = vmatpush3.bf16.msra.mxu0 %v5801_v30 }
 0x6dc   :  { %5039 = vmatprep.subr.bf16.mxu0 %v5938_v22  ;;  %v3124_v22 = vmul.f32 %v3115_v6, %v3115_v6 }
 0x6de   :  { %v3125_v26 = vsub.f32 %v3123_v31, %v3124_v22 }
 0x6df   :  { %5040 = vmatpush3.bf16.msra.mxu0 %v5802_v11 }
 0x6e0   :  { %v3126_v9 = vmax.f32 %v3125_v26, 0.0 }
 0x6e2   :  { %v3128_v13 = vadd.f32 1e-05, %v3126_v9 }
 0x6e4   :  { %5923 = vrsqrt.f32 %v3128_v13 }
 0x6ee   :  { %v5924_v35 = vpop.eup %5923 }
 0x6ef   :  { %v3130_v48 = vmul.f32 %v5924_v35, %v3127_v19 }
 0x6f1   :  { %v3138_v50 = vmul.f32 %v4753_v49, %v3130_v48 }
 0x6f3   :  { %v3146_v56 = vadd.f32 %v4754_v52, %v3138_v50 }
 0x6f5   :  { %v4279_v16 = vadd.f32 %v3319_v54, %v3146_v56 }
 0x795   :  { %v4273_v53 = vpop.f32.mrb[32].mxu0 }
 0x796   :  { %v4274_v14 = vadd.f32 %v4845_v57, %v4273_v53  ;;  %v5023_v17 = vpop.f32.mrb[33].mxu0 }
 0x797   :  { %v4276_v21 = vpop.f32.mrb[34].mxu0 }
 0x798   :  { %v4280_v12 = vadd.f32 %v4279_v16, %v4274_v14  ;;  %v5024_v32 = vpop.f32.mrb[35].mxu0 }
 0x79a   :  { %v4281_v15 = vpack.c.bf16 %v4280_v12, %v4280_v12 }
 0x79c   :  { %5042 = vmatmul.mubr.bf16.vlgmr.msra.gmra.mrb[36].mxu0 %v4281_v15 }
 0x86f   :  { %v4387_v34 = vpop.f32.mrb[36].mxu0 }
 0x870   :  { %v4388_v0 = vadd.f32 %v4854_v60, %v4387_v34  ;;  %v5043_v36 = vpop.f32.mrb[37].mxu0 }
 0x871   :  { %v4390_v33 = vpop.f32.mrb[38].mxu0 }
 0x872   :  { %4393 = vst [vmem:[%s7797_s17] sm:$0xff] %v4388_v0  ;;  %v5044_v4 = vpop.f32.mrb[39].mxu0 }

</bundles_post_ra>
